<compile_context>
chip_gen: v7x
topology: tpu7x:2x2x1
jax: 0.10.0
libtpu: 0.0.40
codegen_flags: <defaults>
</compile_context>

<pallas_src>
import math
import numpy as np
import jax
import jax.numpy as jnp
from jax.experimental import pallas as pl
from jax.experimental.pallas import tpu as pltpu


_VMEM_LIMIT_BYTES = 32 * 1024 * 1024       # safe on v5e / v6e / v7x
_RESIDENT_BUDGET_BYTES = 12 * 1024 * 1024  # resident-weight path budget (v7x-safe)


def _round_up(x, m):
    return ((x + m - 1) // m) * m


def _sublane_align(dtype):
    # second-minor packing: f32 -> 8 rows/vreg, bf16 -> 16, int8/fp8 -> 32
    return {4: 8, 2: 16, 1: 32}.get(jnp.dtype(dtype).itemsize, 8)


def _pick_tile(padded, align, max_tile):
    """Largest tile <= max_tile (multiple of `align`) that divides `padded`."""
    tile = min(max_tile, padded)
    tile -= tile % align
    tile = max(tile, align)
    while padded % tile:
        tile -= align
    return tile


# ---------------------------------------------------------------------------
# Kernels
# ---------------------------------------------------------------------------
def _resident_mm_kernel(x_ref, w_ref, o_ref):
    # Whole (padded) weight is resident in VMEM; one MXU pass per x tile.
    o_ref[...] = jnp.dot(
        x_ref[...], w_ref[...], preferred_element_type=jnp.float32
    ).astype(o_ref.dtype)


def _tiled_mm_kernel(x_ref, w_ref, o_ref, acc_ref):
    @pl.when(pl.program_id(2) == 0)
    def _init():
        acc_ref[...] = jnp.zeros_like(acc_ref)

    acc_ref[...] += jnp.dot(
        x_ref[...], w_ref[...], preferred_element_type=jnp.float32
    )

    @pl.when(pl.program_id(2) == pl.num_programs(2) - 1)
    def _store():
        o_ref[...] = acc_ref[...].astype(o_ref.dtype)


# ---------------------------------------------------------------------------
# Padded matmul dispatcher (operands already lane/sublane aligned).
# ---------------------------------------------------------------------------
def _mm_padded(xp, wp, *, out_dtype=jnp.float32, force_streaming=False):
    Mp, Kp = xp.shape
    Kp2, Np = wp.shape
    assert Kp == Kp2, (xp.shape, wp.shape)
    in_bytes = jnp.dtype(xp.dtype).itemsize
    out_bytes = jnp.dtype(out_dtype).itemsize
    m_align = _sublane_align(xp.dtype)

    # ---- weight-resident path (small-batch inference): weight DMA'd once ----
    tm_r = _pick_tile(Mp, m_align, 256)
    resident_footprint = (
        Kp * Np * in_bytes               # resident weight (constant index_map)
        + 2 * tm_r * Kp * in_bytes       # double-buffered x tile
        + 2 * tm_r * Np * out_bytes      # double-buffered out tile
    )
    if (not force_streaming) and resident_footprint <= _RESIDENT_BUDGET_BYTES:
        return pl.pallas_call(
            _resident_mm_kernel,
            out_shape=jax.ShapeDtypeStruct((Mp, Np), out_dtype),
            grid_spec=pltpu.PrefetchScalarGridSpec(
                num_scalar_prefetch=0,
                grid=(Mp // tm_r,),
                in_specs=[
                    pl.BlockSpec((tm_r, Kp), lambda i: (i, 0)),
                    pl.BlockSpec((Kp, Np), lambda i: (0, 0)),   # fetched once
                ],
                out_specs=pl.BlockSpec((tm_r, Np), lambda i: (i, 0)),
            ),
            compiler_params=pltpu.CompilerParams(
                dimension_semantics=("parallel",),
                vmem_limit_bytes=_VMEM_LIMIT_BYTES,
            ),
            cost_estimate=pl.CostEstimate(
                flops=2 * Mp * Np * Kp,
                transcendentals=0,
                bytes_accessed=(Mp * Kp * in_bytes
                                + Kp * Np * in_bytes
                                + Mp * Np * out_bytes),
            ),
        )(xp, wp)

    # ---- streaming tiled path -----------------------------------------------
    tm = _pick_tile(Mp, m_align, 256)
    tn = _pick_tile(Np, 128, 512)
    tk = _pick_tile(Kp, 128, 1024)
    n_i, n_j = Mp // tm, Np // tn
    # v7x megacore: keep the number of parallel (i, j) blocks even when possible.
    if (n_i * n_j) % 2 == 1 and tm % (2 * m_align) == 0 and tm > m_align:
        tm //= 2
        n_i *= 2
    n_k = Kp // tk

    bytes_accessed = (n_j * Mp * Kp * in_bytes     # x re-read per N tile
                      + n_i * Kp * Np * in_bytes   # w re-read per M tile
                      + Mp * Np * out_bytes)

    return pl.pallas_call(
        _tiled_mm_kernel,
        out_shape=jax.ShapeDtypeStruct((Mp, Np), out_dtype),
        grid_spec=pltpu.PrefetchScalarGridSpec(
            num_scalar_prefetch=0,
            grid=(n_i, n_j, n_k),
            in_specs=[
                pl.BlockSpec((tm, tk), lambda i, j, k: (i, k)),
                pl.BlockSpec((tk, tn), lambda i, j, k: (k, j)),
            ],
            out_specs=pl.BlockSpec((tm, tn), lambda i, j, k: (i, j)),
            scratch_shapes=[pltpu.VMEM((tm, tn), jnp.float32)],
        ),
        compiler_params=pltpu.CompilerParams(
            dimension_semantics=("parallel", "parallel", "arbitrary"),
            vmem_limit_bytes=_VMEM_LIMIT_BYTES,
        ),
        cost_estimate=pl.CostEstimate(
            flops=2 * Mp * Np * Kp,
            transcendentals=0,
            bytes_accessed=bytes_accessed,
        ),
    )(xp, wp)


# ---------------------------------------------------------------------------
# General-purpose wrapper (handles padding / dtype) -- used for direct tests.
# ---------------------------------------------------------------------------
def masked_mm_pallas(x, w, *, compute_dtype=jnp.bfloat16, out_dtype=jnp.float32,
                     force_streaming=False):
    """x (M,K) @ w (K,N) -> (M,N) in out_dtype, f32 accumulation on the MXU."""
    M, K = x.shape
    K2, N = w.shape
    assert K == K2, (x.shape, w.shape)
    if compute_dtype is not None:
        x = x.astype(compute_dtype)
        w = w.astype(compute_dtype)
    m_align = _sublane_align(x.dtype)
    Mp = _round_up(M, m_align)
    Kp = _round_up(K, 128)
    Np = _round_up(N, 128)
    if (Mp, Kp) != (M, K):
        x = jnp.pad(x, ((0, Mp - M), (0, Kp - K)))
    if (Kp, Np) != (K, N):
        w = jnp.pad(w, ((0, Kp - K), (0, Np - N)))
    out = _mm_padded(x, w, out_dtype=out_dtype, force_streaming=force_streaming)
    if (Mp, Np) != (M, N):
        out = out[:M, :N]
    return out


# ---------------------------------------------------------------------------
# Module-equivalent parameter setup + jitted forward glue.
# ---------------------------------------------------------------------------
class MaskedMLPPallas:
    """JAX/Pallas port of MaskedMLP's forward path (after reinit_weight)."""

    def __init__(self, in_size, out_size, key, compute_dtype=jnp.bfloat16):
        self.in_size = in_size
        self.out_size = out_size
        self.compute_dtype = compute_dtype   # bf16 operands, f32 accumulation

        k_w, k_b = jax.random.split(key)
        # nn.init.kaiming_uniform_(weight, a=sqrt(5)) on shape (out, in):
        #   bound = sqrt(2/(1+5)) * sqrt(3/fan_in) = 1/sqrt(fan_in)
        fan_in = in_size
        w_bound = math.sqrt(2.0 / 6.0) * math.sqrt(3.0 / fan_in)
        self.weight = jax.random.uniform(
            k_w, (out_size, in_size), jnp.float32, -w_bound, w_bound)
        b_bound = 1.0 / math.sqrt(fan_in)
        self.bias = jax.random.uniform(
            k_b, (out_size,), jnp.float32, -b_bound, b_bound)  # unused in forward
        self.threshold = jnp.zeros((1,), jnp.float32)          # unused in forward
        self.mask = jnp.ones((in_size,), jnp.float32)
        self._fwd = None

    def reinit_weight(self):
        # Mirrors torch: the mask is consumed once here (concrete, host-side,
        # like torch's .nonzero()); nothing data-dependent remains per call.
        mask_np = np.asarray(self.mask) != 0
        idx_np = np.nonzero(mask_np)[0].astype(np.int32)
        self.boolmask = jnp.asarray(mask_np)
        self.idx = jnp.asarray(idx_np)
        # torch-equivalent pruned weight (n_kept, out) -- kept for reference use.
        self.weight_t = jnp.take(self.weight, self.idx, axis=1).T

        # Forward weight: full (in_size, out_size) with zero rows at masked
        # positions -> exactly x[:, mask] @ weight_t, but without any per-call
        # lane-axis gather of x.  Cast + pad ONCE here (hoisted out of fwd).
        mask_col = jnp.asarray(mask_np).astype(self.weight.dtype)[:, None]
        w_full = self.weight.T * mask_col                       # (in, out)
        compute_dtype = self.compute_dtype
        if compute_dtype is not None:
            w_full = w_full.astype(compute_dtype)
        Kp = _round_up(self.in_size, 128)
        Np = _round_up(self.out_size, 128)
        if (Kp, Np) != w_full.shape:
            w_full = jnp.pad(w_full, ((0, Kp - self.in_size),
                                      (0, Np - self.out_size)))
        self._wp = jax.device_put(w_full)
        self._Kp, self._Np = Kp, Np

        out_size = self.out_size
        m_align = _sublane_align(compute_dtype if compute_dtype is not None
                                 else self.weight.dtype)

        @jax.jit
        def fwd(x, wp):
            B, K = x.shape
            xb = x if compute_dtype is None else x.astype(compute_dtype)
            Mp = _round_up(B, m_align)
            xp = jnp.pad(xb, ((0, Mp - B), (0, Kp - K)))
            out = _mm_padded(xp, wp)
            return out[:B, :out_size]

        self._fwd = fwd

    def forward(self, x):
        assert self._fwd is not None, "call reinit_weight() first (as in torch)"
        return self._fwd(x, self._wp)


# ---------------------------------------------------------------------------
if __name__ == "__main__":
    key = jax.random.PRNGKey(0)
    k1, k2, k3, k4 = jax.random.split(key, 4)

    def bf16_f64(a):
        # bf16-rounded operand values as float64 (matches kernel operands).
        return np.asarray(
            jnp.asarray(a).astype(jnp.bfloat16).astype(jnp.float32), np.float64)

    # --- Test 1: streaming tiled Pallas matmul (multi-block grid, K accumulation)
    M, K, N = 256, 1152, 512
    a = jax.random.normal(k1, (M, K), jnp.float32)
    b = jax.random.normal(k2, (K, N), jnp.float32)
    mm = jax.jit(lambda p, q: masked_mm_pallas(p, q, force_streaming=True))
    out1 = jax.block_until_ready(mm(a, b))
    ref1 = bf16_f64(a) @ bf16_f64(b)
    np.testing.assert_allclose(np.asarray(out1, np.float64), ref1,
                               rtol=1e-3, atol=2e-2)

    # --- Test 2: module at the original tiny size (weight-resident path)
    B, in_size, out_size = 8, 32, 32
    model = MaskedMLPPallas(in_size, out_size, k3)
    model.reinit_weight()
    x_small = jax.random.normal(k4, (B, in_size), jnp.float32)
    out2 = jax.block_until_ready(model.forward(x_small))
    ref2 = bf16_f64(x_small) @ bf16_f64(model.weight_t)
    np.testing.assert_allclose(np.asarray(out2, np.float64), ref2,
                               rtol=1e-3, atol=1e-2)

    # --- Test 3: module with a real pruning mask (zero-row weight equivalence)
    B2, in2, out_sz2 = 24, 96, 160
    model2 = MaskedMLPPallas(in2, out_sz2, k1)
    model2.mask = (jnp.arange(in2) % 3 != 0).astype(jnp.float32)   # prune 1/3
    model2.reinit_weight()
    x_big = jax.random.normal(k2, (B2, in2), jnp.float32)
    out3 = jax.block_until_ready(model2.forward(x_big))
    pruned = bf16_f64(x_big)[:, np.asarray(model2.boolmask)]
    ref3 = pruned @ bf16_f64(model2.weight_t)
    np.testing.assert_allclose(np.asarray(out3, np.float64), ref3,
                               rtol=1e-3, atol=1e-2)

    print("KERNEL_OK")
</pallas_src>

<mosaic_0001>
module attributes {stable_mosaic.version = 11 : i64} {
  func.func @_tiled_mm_kernel(%arg0: i32, %arg1: i32, %arg2: i32, %arg3: memref<128x384xbf16, #tpu.memory_space<vmem>>, %arg4: memref<384x512xbf16, #tpu.memory_space<vmem>>, %arg5: memref<128x512xf32, #tpu.memory_space<vmem>>, %arg6: memref<128x512xf32, #tpu.memory_space<vmem>>) attributes {dimension_semantics = [#tpu.dimension_semantics<parallel>, #tpu.dimension_semantics<parallel>, #tpu.dimension_semantics<arbitrary>], iteration_bounds = array<i64: 2, 1, 3>, scalar_prefetch = 0 : i64, scratch_operands = 1 : i64, tpu.core_type = #tpu.core_type<tc>, window_params = [{transform_indices = @transform_0, window_bounds = array<i64: 128, 384>}, {transform_indices = @transform_1, window_bounds = array<i64: 384, 512>}, {transform_indices = @transform_2, window_bounds = array<i64: 128, 512>}]} {
    %c0_i32 = arith.constant 0 : i32
    %0 = arith.cmpi eq, %arg2, %c0_i32 : i32
    %1 = arith.extui %0 : i1 to i32
    %c0_i32_0 = arith.constant 0 : i32
    %2 = arith.cmpi ne, %1, %c0_i32_0 : i32
    scf.if %2 {
      %cst_9 = arith.constant 0.000000e+00 : f32
      %12 = vector.broadcast %cst_9 : f32 to vector<128x512xf32>
      %c0_10 = arith.constant 0 : index
      %c0_11 = arith.constant 0 : index
      %13 = vector.load %arg6[%c0_10, %c0_11] : memref<128x512xf32, #tpu.memory_space<vmem>>, vector<128x512xf32>
      tpu.vector_store %arg6[%c0_10, %c0_11], %12 {strides = array<i32>} : memref<128x512xf32, #tpu.memory_space<vmem>>, vector<128x512xf32>,
    } else {
    }
    %c0 = arith.constant 0 : index
    %c0_1 = arith.constant 0 : index
    %3 = vector.load %arg6[%c0, %c0_1] : memref<128x512xf32, #tpu.memory_space<vmem>>, vector<128x512xf32>
    %c0_2 = arith.constant 0 : index
    %c0_3 = arith.constant 0 : index
    %4 = vector.load %arg3[%c0_2, %c0_3] : memref<128x384xbf16, #tpu.memory_space<vmem>>, vector<128x384xbf16>
    %c0_4 = arith.constant 0 : index
    %c0_5 = arith.constant 0 : index
    %5 = vector.load %arg4[%c0_4, %c0_5] : memref<384x512xbf16, #tpu.memory_space<vmem>>, vector<384x512xbf16>
    %cst = arith.constant dense<0.000000e+00> : vector<128x512xf32>
    %6 = tpu.matmul %4, %5, %cst {dimension_numbers = #tpu.dot_dimension_numbers<[1], [0], [0], [1], [0, 0, 1, 1], [], []>} : vector<128x384xbf16>, vector<384x512xbf16>, vector<128x512xf32> -> vector<128x512xf32>
    %7 = arith.addf %3, %6 : vector<128x512xf32>
    %c0_6 = arith.constant 0 : index
    %c0_7 = arith.constant 0 : index
    %8 = vector.load %arg6[%c0_6, %c0_7] : memref<128x512xf32, #tpu.memory_space<vmem>>, vector<128x512xf32>
    tpu.vector_store %arg6[%c0_6, %c0_7], %7 {strides = array<i32>} : memref<128x512xf32, #tpu.memory_space<vmem>>, vector<128x512xf32>,
    %c2_i32 = arith.constant 2 : i32
    %9 = arith.cmpi eq, %arg2, %c2_i32 : i32
    %10 = arith.extui %9 : i1 to i32
    %c0_i32_8 = arith.constant 0 : i32
    %11 = arith.cmpi ne, %10, %c0_i32_8 : i32
    scf.if %11 {
      %c0_9 = arith.constant 0 : index
      %c0_10 = arith.constant 0 : index
      %12 = vector.load %arg6[%c0_9, %c0_10] : memref<128x512xf32, #tpu.memory_space<vmem>>, vector<128x512xf32>
      %c0_11 = arith.constant 0 : index
      %c0_12 = arith.constant 0 : index
      %13 = vector.load %arg5[%c0_11, %c0_12] : memref<128x512xf32, #tpu.memory_space<vmem>>, vector<128x512xf32>
      tpu.vector_store %arg5[%c0_11, %c0_12], %12 {strides = array<i32>} : memref<128x512xf32, #tpu.memory_space<vmem>>, vector<128x512xf32>,
    } else {
    }
    return
  }
  func.func @transform_0(%arg0: i32, %arg1: i32, %arg2: i32) -> (i32, i32) {
    %c0_i32 = arith.constant 0 : i32
    return %arg0, %arg2 : i32, i32
  }
  func.func @transform_1(%arg0: i32, %arg1: i32, %arg2: i32) -> (i32, i32) {
    %c0_i32 = arith.constant 0 : i32
    return %arg2, %arg1 : i32, i32
  }
  func.func @transform_2(%arg0: i32, %arg1: i32, %arg2: i32) -> (i32, i32) {
    %c0_i32 = arith.constant 0 : i32
    return %arg0, %arg1 : i32, i32
  }
}

</mosaic_0001>

<bundles_post_ra>
// kernel: _lambda_.1
= control target key start
LH: loop header
LB: loop body
LE: loop exit
PB: predicated region body
PF: predicated region fallthrough
CT: control target
= control target key end

     0   :  { %7 = vsyncpa [#allocation5], 0  ;;  %s3154_s0 = inlined_call_operand.vmem [shape: bf16[256,1152], index: 0, kind: input, shape index: {}]   ;;  %s3155_s1 = inlined_call_operand.vmem [shape: bf16[1152,512], index: 1, kind: input, shape index: {}]   ;;  %s3156_s2 = inlined_call_operand.hbm [shape: f32[256,512], index: 2, kind: output, shape index: {}]  }
   0x1   :  { %9 = vsyncpa [#allocation5 + $0x1], 0  ;;  %s2652_s9 = smov 0   ;;  %s2654_s10 = smov 0  }
   0x2   :  { %s2656_s11 = smov 0   ;;  %s2658_s12 = smov 0  }
   0x3   :  { %s2660_s13 = smov 0   ;;  %s2662_s14 = smov 0  }
   0x4   :  { %s2664_s15 = smov 0   ;;  %s2666_s16 = smov 0  }
   0x5   :  { %s2668_s17 = smov 0   ;;  %s2670_s18 = smov 0  }
   0x6 LB: > { %s2012_s19 = sadd.s32 4294967295, %s2630_s18   ;;  %s2013_s20 = sadd.s32 4294967294, %s2630_s18   ;;  %s2630_s18 = sphi %s2670_s18, %s15_s18   ;;  %s2626_s17 = sphi %s2668_s17, %s3168_s17   ;;  %s2622_s16 = sphi %s2666_s16, %s3167_s16   ;;  %s2618_s15 = sphi %s2664_s15, %s3166_s15   ;;  %s2614_s14 = sphi %s2662_s14, %s3165_s14   ;;  %s2610_s13 = sphi %s2660_s13, %s3164_s13   ;;  %s2606_s12 = sphi %s2658_s12, %s3163_s12   ;;  %s2602_s11 = sphi %s2656_s11, %s3162_s11   ;;  %s2598_s10 = sphi %s2654_s10, %s3161_s10   ;;  %s2594_s9 = sphi %s2652_s9, %s3160_s9  }
   0x7   : > { %s27_s21 = sadd.s32 1, %s2622_s16  ;;  %s34_s22 = sadd.s32 1, %s2626_s17 }
   0x8   : > { %p28_p0 = scmp.ge.s32.totalorder %s27_s21, 3  ;;  %s43_s23 = sadd.s32 1, %s2610_s13 }
   0x9   : > { %p50_p1 = scmp.ne.s32.totalorder %s2610_s13, %s2606_s12  ;;  %p51_p2 = scmp.eq.s32.totalorder %s2630_s18, 0 }
   0xa   : > { %s3170_s21 = smov (%p28_p0, %s27_s21), 0  ;;  %s3172_s22 = smov (!%p28_p0, %s34_s22), %s2626_s17 }
   0xb   : > { %s39_s24 = ssub.s32 %s2622_s16, %s3170_s21  ;;  %p2715_p3 = por %p51_p2, %p50_p1 }
   0xc   : > { %p36_p4 = scmp.ge.s32.totalorder %s3172_s22, 2  ;;  %s99_s26 = sadd.s32 1, %s2602_s11 }
   0xd   : > { %p109_p5 = scmp.ne.s32.totalorder %s2602_s11, %s2598_s10  ;;  %p110_p6 = scmp.eq.s32.totalorder %s2012_s19, 5 }
   0xe   : > { %s3174_s22 = smov (%p36_p4, %s3172_s22), 0  ;;  %p115_p8 = scmp.ne.s32.totalorder %s2598_s10, %s2594_s9 }
   0xf   : > { %p2724_p7 = por %p110_p6, %p109_p5  ;;  %s38_s28 = ssub.s32 %s2626_s17, %s3174_s22 }
  0x10   : > { %p116_p9 = scmp.eq.s32.totalorder %s2013_s20, 5  ;;  %s40_s29 = sor.u32 %s39_s24, %s38_s28 }
  0x11   : > { %p97_p10 = scmp.eq.s32.totalorder %s38_s28, 0  ;;  %p41_p11 = scmp.eq.s32.totalorder %s40_s29, 0 }
  0x12   : > { %p2732_p12 = por %p116_p9, %p115_p8  ;;  %p2015_p13 = scmp.ge.s32.totalorder %s2630_s18, 6 }
  0x13   : > { %s2737_s3 = scalar_select %p97_p10, %s2602_s11, %s99_s26  }
  0x14   : > { %s2740_s4 = scalar_select %p41_p11, %s2610_s13, %s43_s23  }
  0x15   : > { %132 = sbr.rel (%p2015_p13) target bundleno = 55 (0x37), region = 16 }
  0x1c   : > { %135 = sbr.rel (!%p2715_p3) target bundleno = 55 (0x37), region = 20  ;;  %s137_s5 = sand.u32 (%p2715_p3), 1, %s2610_s13  }
  0x1d   : > { %s141_s6 = smul.u32 (%p2715_p3), 3, %s2622_s16 }
  0x1e   : > { %s2250_s7 = smul.u32 (%p2715_p3), 192, %s137_s5 }
  0x1f   : > { %s2251_s8 = smul.u32 (%p2715_p3), 144, %s2626_s17 }
  0x20   : > { %s2756_s25 = scalar_lea.vmem (%p2715_p3), [#allocation3], %s2250_s7 }
  0x21   : > { %s143_s19 = sadd.s32 (%p2715_p3), %s2251_s8, %s141_s6 }
  0x22   : > { %s2018_s20 = sshll.u32 (%p2715_p3), %s143_s19, 2 }
  0x23   : > { %s2751_s23 = scalar_lea.vmem %s3154_s0, %s2018_s20 }
  0x24   : > { %v160_v0 = vld [vmem:[%s2751_s23] sm:$0xff]  ;;  %v164_v2 = vld [vmem:[%s2751_s23 + $0x48] sm:$0xff]  ;;  %v168_v4 = vld [vmem:[%s2751_s23 + $0x90] sm:$0xff] }
  0x25   : > { %v162_v1 = vld [vmem:[%s2751_s23 + $0x24] sm:$0xff]  ;;  %161 = vst [vmem:[%s2756_s25] sm:$0xff] %v160_v0  ;;  %165 = vst [vmem:[%s2756_s25 + $0x18] sm:$0xff] %v164_v2  ;;  %v166_v3 = vld [vmem:[%s2751_s23 + $0x6c] sm:$0xff] }
  0x26   : > { %163 = vst [vmem:[%s2756_s25 + $0xc] sm:$0xff] %v162_v1  ;;  %v170_v5 = vld [vmem:[%s2751_s23 + $0xb4] sm:$0xff]  ;;  %167 = vst [vmem:[%s2756_s25 + $0x24] sm:$0xff] %v166_v3  ;;  %v174_v7 = vld [vmem:[%s2751_s23 + $0xfc] sm:$0xff] }
  0x27   : > { %169 = vst [vmem:[%s2756_s25 + $0x30] sm:$0xff] %v168_v4  ;;  %171 = vst [vmem:[%s2756_s25 + $0x3c] sm:$0xff] %v170_v5  ;;  %v172_v6 = vld [vmem:[%s2751_s23 + $0xd8] sm:$0xff]  ;;  %v176_v8 = vld [vmem:[%s2751_s23 + $0x120] sm:$0xff] }
  0x28   : > { %173 = vst [vmem:[%s2756_s25 + $0x48] sm:$0xff] %v172_v6  ;;  %175 = vst [vmem:[%s2756_s25 + $0x54] sm:$0xff] %v174_v7  ;;  %v178_v9 = vld [vmem:[%s2751_s23 + $0x144] sm:$0xff]  ;;  %v182_v11 = vld [vmem:[%s2751_s23 + $0x18c] sm:$0xff] }
  0x29   : > { %177 = vst [vmem:[%s2756_s25 + $0x60] sm:$0xff] %v176_v8  ;;  %v180_v10 = vld [vmem:[%s2751_s23 + $0x168] sm:$0xff]  ;;  %179 = vst [vmem:[%s2756_s25 + $0x6c] sm:$0xff] %v178_v9  ;;  %v184_v12 = vld [vmem:[%s2751_s23 + $0x1b0] sm:$0xff] }
  0x2a   : > { %181 = vst [vmem:[%s2756_s25 + $0x78] sm:$0xff] %v180_v10  ;;  %183 = vst [vmem:[%s2756_s25 + $0x84] sm:$0xff] %v182_v11  ;;  %v186_v13 = vld [vmem:[%s2751_s23 + $0x1d4] sm:$0xff]  ;;  %v190_v15 = vld [vmem:[%s2751_s23 + $0x21c] sm:$0xff] }
  0x2b   : > { %v188_v14 = vld [vmem:[%s2751_s23 + $0x1f8] sm:$0xff]  ;;  %185 = vst [vmem:[%s2756_s25 + $0x90] sm:$0xff] %v184_v12  ;;  %187 = vst [vmem:[%s2756_s25 + $0x9c] sm:$0xff] %v186_v13  ;;  %v2019_v16 = vld [vmem:[%s2751_s23 + $0x8] sm:$0xf] }
  0x2c   : > { %189 = vst [vmem:[%s2756_s25 + $0xa8] sm:$0xff] %v188_v14  ;;  %v2021_v17 = vld [vmem:[%s2751_s23 + $0x2c] sm:$0xf]  ;;  %191 = vst [vmem:[%s2756_s25 + $0xb4] sm:$0xff] %v190_v15  ;;  %v2023_v18 = vld [vmem:[%s2751_s23 + $0x50] sm:$0xf] }
  0x2d   : > { %2020 = vst [vmem:[%s2756_s25 + $0x8] sm:$0xf] %v2019_v16  ;;  %2022 = vst [vmem:[%s2756_s25 + $0x14] sm:$0xf] %v2021_v17  ;;  %v2025_v19 = vld [vmem:[%s2751_s23 + $0x74] sm:$0xf] }
  0x2e   : > { %v2027_v20 = vld [vmem:[%s2751_s23 + $0x98] sm:$0xf]  ;;  %2024 = vst [vmem:[%s2756_s25 + $0x20] sm:$0xf] %v2023_v18  ;;  %2026 = vst [vmem:[%s2756_s25 + $0x2c] sm:$0xf] %v2025_v19 }
  0x2f   : > { %2028 = vst [vmem:[%s2756_s25 + $0x38] sm:$0xf] %v2027_v20  ;;  %v2029_v21 = vld [vmem:[%s2751_s23 + $0xbc] sm:$0xf]  ;;  %v2031_v22 = vld [vmem:[%s2751_s23 + $0xe0] sm:$0xf] }
  0x30   : > { %v2033_v23 = vld [vmem:[%s2751_s23 + $0x104] sm:$0xf]  ;;  %2030 = vst [vmem:[%s2756_s25 + $0x44] sm:$0xf] %v2029_v21  ;;  %2032 = vst [vmem:[%s2756_s25 + $0x50] sm:$0xf] %v2031_v22 }
  0x31   : > { %2034 = vst [vmem:[%s2756_s25 + $0x5c] sm:$0xf] %v2033_v23  ;;  %v2035_v24 = vld [vmem:[%s2751_s23 + $0x128] sm:$0xf]  ;;  %v2037_v25 = vld [vmem:[%s2751_s23 + $0x14c] sm:$0xf] }
  0x32   : > { %v2039_v26 = vld [vmem:[%s2751_s23 + $0x170] sm:$0xf]  ;;  %2036 = vst [vmem:[%s2756_s25 + $0x68] sm:$0xf] %v2035_v24  ;;  %2038 = vst [vmem:[%s2756_s25 + $0x74] sm:$0xf] %v2037_v25 }
  0x33   : > { %2040 = vst [vmem:[%s2756_s25 + $0x80] sm:$0xf] %v2039_v26  ;;  %v2041_v27 = vld [vmem:[%s2751_s23 + $0x194] sm:$0xf]  ;;  %v2043_v28 = vld [vmem:[%s2751_s23 + $0x1b8] sm:$0xf] }
  0x34   : > { %v2045_v29 = vld [vmem:[%s2751_s23 + $0x1dc] sm:$0xf]  ;;  %2042 = vst [vmem:[%s2756_s25 + $0x8c] sm:$0xf] %v2041_v27  ;;  %2044 = vst [vmem:[%s2756_s25 + $0x98] sm:$0xf] %v2043_v28 }
  0x35   : > { %2046 = vst [vmem:[%s2756_s25 + $0xa4] sm:$0xf] %v2045_v29  ;;  %v2047_v30 = vld [vmem:[%s2751_s23 + $0x200] sm:$0xf]  ;;  %v2049_v31 = vld [vmem:[%s2751_s23 + $0x224] sm:$0xf] }
  0x36   : > { %2048 = vst [vmem:[%s2756_s25 + $0xb0] sm:$0xf] %v2047_v30  ;;  %2050 = vst [vmem:[%s2756_s25 + $0xbc] sm:$0xf] %v2049_v31 }
  0x37 PF: > { %p2051_p0 = scmp.ge.s32.totalorder %s2630_s18, 1  ;;  %p250_p1 = scmp.lt.s32.totalorder %s2630_s18, 7 }
  0x39   : > { %p251_p2 = pnand %p2051_p0, %p250_p1 }
  0x3a   : > { %s257_s28 = sand.u32 (!%p251_p2), 1, %s2606_s12   ;;  %s285_s29 = sand.u32 (!%p251_p2), 1, %s2598_s10  }
  0x3b   : > { %254 = sbr.rel (%p251_p2) target bundleno = 552 (0x228), region = 50  ;;  %s2052_s6 = sshll.u32 (!%p251_p2), %s285_s29, 9 }
  0x3c   : > { %s2252_s5 = smul.u32 (!%p251_p2), 192, %s257_s28  ;;  %s2833_s23 = scalar_lea.vmem (!%p251_p2), [#allocation4], %s2052_s6 }
  0x3d   : > { %s290_s7 = smul.u32 (!%p251_p2), 48, %s2614_s14  ;;  %p2055_p4 = scmp.ne.s32.totalorder (!%p251_p2), %s2614_s14, 0 }
  0x3e   : > { %s2831_s26 = scalar_lea.vmem (!%p251_p2), [#allocation3], %s2252_s5 }
  0x3f   : > { %p292_p3 = scmp.lt.s32.totalorder (!%p251_p2), %s290_s7, 143 }
  0x42   : > { %s3176_s7 = smov (!%p292_p3, %s290_s7), 143  ;;  %308 = sbr.rel (%p2055_p4) target bundleno = 100 (0x64), region = 58 }
  0x43   : > { %s2183_s8 = sshll.u32 %s3176_s7, 4  ;;  %v2632_v32 = vmov (!%p2055_p4), 0.0  }
  0x44   : > { %s2829_s24 = scalar_lea.vmem %s3155_s1, %s2183_s8  ;;  %309 = vst [vmem:[#allocation2] sm:$0xff] (!%p2055_p4), %v2632_v32  ;;  %310 = vst [vmem:[#allocation2 + $0x8] sm:$0xff] (!%p2055_p4), %v2632_v32 }
  0x45   : > { %311 = vst [vmem:[#allocation2 + $0x10] sm:$0xff] (!%p2055_p4), %v2632_v32  ;;  %312 = vst [vmem:[#allocation2 + $0x18] sm:$0xff] (!%p2055_p4), %v2632_v32 }
  0x46   : > { %313 = vst [vmem:[#allocation2 + $0x20] sm:$0xff] (!%p2055_p4), %v2632_v32  ;;  %314 = vst [vmem:[#allocation2 + $0x28] sm:$0xff] (!%p2055_p4), %v2632_v32 }
  0x47   : > { %315 = vst [vmem:[#allocation2 + $0x30] sm:$0xff] (!%p2055_p4), %v2632_v32  ;;  %316 = vst [vmem:[#allocation2 + $0x38] sm:$0xff] (!%p2055_p4), %v2632_v32 }
  0x48   : > { %317 = vst [vmem:[#allocation2 + $0x40] sm:$0xff] (!%p2055_p4), %v2632_v32  ;;  %318 = vst [vmem:[#allocation2 + $0x48] sm:$0xff] (!%p2055_p4), %v2632_v32 }
  0x49   : > { %319 = vst [vmem:[#allocation2 + $0x50] sm:$0xff] %v2632_v32  ;;  %320 = vst [vmem:[#allocation2 + $0x58] sm:$0xff] %v2632_v32 }
  0x4a   : > { %321 = vst [vmem:[#allocation2 + $0x60] sm:$0xff] %v2632_v32  ;;  %322 = vst [vmem:[#allocation2 + $0x68] sm:$0xff] %v2632_v32 }
  0x4b   : > { %323 = vst [vmem:[#allocation2 + $0x70] sm:$0xff] %v2632_v32  ;;  %324 = vst [vmem:[#allocation2 + $0x78] sm:$0xff] %v2632_v32 }
  0x4c   : > { %325 = vst [vmem:[#allocation2 + $0x80] sm:$0xff] %v2632_v32  ;;  %326 = vst [vmem:[#allocation2 + $0x88] sm:$0xff] %v2632_v32 }
  0x4d   : > { %327 = vst [vmem:[#allocation2 + $0x90] sm:$0xff] %v2632_v32  ;;  %328 = vst [vmem:[#allocation2 + $0x98] sm:$0xff] %v2632_v32 }
  0x4e   : > { %329 = vst [vmem:[#allocation2 + $0xa0] sm:$0xff] %v2632_v32  ;;  %330 = vst [vmem:[#allocation2 + $0xa8] sm:$0xff] %v2632_v32 }
  0x4f   : > { %331 = vst [vmem:[#allocation2 + $0xb0] sm:$0xff] %v2632_v32  ;;  %332 = vst [vmem:[#allocation2 + $0xb8] sm:$0xff] %v2632_v32 }
  0x50   : > { %333 = vst [vmem:[#allocation2 + $0xc0] sm:$0xff] %v2632_v32  ;;  %334 = vst [vmem:[#allocation2 + $0xc8] sm:$0xff] %v2632_v32 }
  0x51   : > { %335 = vst [vmem:[#allocation2 + $0xd0] sm:$0xff] %v2632_v32  ;;  %336 = vst [vmem:[#allocation2 + $0xd8] sm:$0xff] %v2632_v32 }
  0x52   : > { %337 = vst [vmem:[#allocation2 + $0xe0] sm:$0xff] %v2632_v32  ;;  %338 = vst [vmem:[#allocation2 + $0xe8] sm:$0xff] %v2632_v32 }
  0x53   : > { %339 = vst [vmem:[#allocation2 + $0xf0] sm:$0xff] %v2632_v32  ;;  %340 = vst [vmem:[#allocation2 + $0xf8] sm:$0xff] %v2632_v32 }
  0x54   : > { %341 = vst [vmem:[#allocation2 + $0x100] sm:$0xff] %v2632_v32  ;;  %342 = vst [vmem:[#allocation2 + $0x108] sm:$0xff] %v2632_v32 }
  0x55   : > { %343 = vst [vmem:[#allocation2 + $0x110] sm:$0xff] %v2632_v32  ;;  %344 = vst [vmem:[#allocation2 + $0x118] sm:$0xff] %v2632_v32 }
  0x56   : > { %345 = vst [vmem:[#allocation2 + $0x120] sm:$0xff] %v2632_v32  ;;  %346 = vst [vmem:[#allocation2 + $0x128] sm:$0xff] %v2632_v32 }
  0x57   : > { %347 = vst [vmem:[#allocation2 + $0x130] sm:$0xff] %v2632_v32  ;;  %348 = vst [vmem:[#allocation2 + $0x138] sm:$0xff] %v2632_v32 }
  0x58   : > { %349 = vst [vmem:[#allocation2 + $0x140] sm:$0xff] %v2632_v32  ;;  %350 = vst [vmem:[#allocation2 + $0x148] sm:$0xff] %v2632_v32 }
  0x59   : > { %351 = vst [vmem:[#allocation2 + $0x150] sm:$0xff] %v2632_v32  ;;  %352 = vst [vmem:[#allocation2 + $0x158] sm:$0xff] %v2632_v32 }
  0x5a   : > { %353 = vst [vmem:[#allocation2 + $0x160] sm:$0xff] %v2632_v32  ;;  %354 = vst [vmem:[#allocation2 + $0x168] sm:$0xff] %v2632_v32 }
  0x5b   : > { %355 = vst [vmem:[#allocation2 + $0x170] sm:$0xff] %v2632_v32  ;;  %356 = vst [vmem:[#allocation2 + $0x178] sm:$0xff] %v2632_v32 }
  0x5c   : > { %357 = vst [vmem:[#allocation2 + $0x180] sm:$0xff] %v2632_v32  ;;  %358 = vst [vmem:[#allocation2 + $0x188] sm:$0xff] %v2632_v32 }
  0x5d   : > { %359 = vst [vmem:[#allocation2 + $0x190] sm:$0xff] %v2632_v32  ;;  %360 = vst [vmem:[#allocation2 + $0x198] sm:$0xff] %v2632_v32 }
  0x5e   : > { %361 = vst [vmem:[#allocation2 + $0x1a0] sm:$0xff] %v2632_v32  ;;  %362 = vst [vmem:[#allocation2 + $0x1a8] sm:$0xff] %v2632_v32 }
  0x5f   : > { %363 = vst [vmem:[#allocation2 + $0x1b0] sm:$0xff] %v2632_v32  ;;  %364 = vst [vmem:[#allocation2 + $0x1b8] sm:$0xff] %v2632_v32 }
  0x60   : > { %365 = vst [vmem:[#allocation2 + $0x1c0] sm:$0xff] %v2632_v32  ;;  %366 = vst [vmem:[#allocation2 + $0x1c8] sm:$0xff] %v2632_v32 }
  0x61   : > { %367 = vst [vmem:[#allocation2 + $0x1d0] sm:$0xff] %v2632_v32  ;;  %368 = vst [vmem:[#allocation2 + $0x1d8] sm:$0xff] %v2632_v32 }
  0x62   : > { %369 = vst [vmem:[#allocation2 + $0x1e0] sm:$0xff] %v2632_v32  ;;  %370 = vst [vmem:[#allocation2 + $0x1e8] sm:$0xff] %v2632_v32 }
  0x63   : > { %371 = vst [vmem:[#allocation2 + $0x1f0] sm:$0xff] %v2632_v32  ;;  %372 = vst [vmem:[#allocation2 + $0x1f8] sm:$0xff] %v2632_v32 }
  0x64 PF: > { %v2344_v33 = vld [vmem:[%s2829_s24 + $0x4] ss:$16 sps:$4 sm:$0xff]   ;;  %v2346_v34 = vld [vmem:[%s2829_s24 + $0xc] ss:$16 sps:$4 sm:$0xff]   ;;  %v2348_v35 = vld [vmem:[%s2829_s24] ss:$16 sps:$4 sm:$0xff]  }
  0x65   : > { %1173 = vmatprep.subr.bf16.mxu0 %v2344_v33  ;;  %v2349_v36 = vld [vmem:[%s2829_s24 + $0x8] ss:$16 sps:$4 sm:$0xff]   ;;  %1399 = vmatprep.subr.bf16.mxu1 %v2346_v34  ;;  %v2350_v37 = vld [vmem:[%s2829_s24 + $0x24] ss:$16 sps:$4 sm:$0xff]   ;;  %v2352_v38 = vld [vmem:[%s2829_s24 + $0x2c] ss:$16 sps:$4 sm:$0xff]  }
  0x66   : > { %1174 = vmatpush1.bf16.msra.mxu0 %v2348_v35  ;;  %1400 = vmatpush1.bf16.msra.mxu1 %v2349_v36  ;;  %v2354_v39 = vld [vmem:[%s2829_s24 + $0x20] ss:$16 sps:$4 sm:$0xff]   ;;  %v2355_v40 = vld [vmem:[%s2829_s24 + $0x28] ss:$16 sps:$4 sm:$0xff]   ;;  %v2356_v41 = vld [vmem:[%s2829_s24 + $0x44] ss:$16 sps:$4 sm:$0xff]  }
  0x67   : > { %1175 = vmatprep.subr.bf16.mxu0 %v2350_v37  ;;  %1401 = vmatprep.subr.bf16.mxu1 %v2352_v38  ;;  %v2358_v42 = vld [vmem:[%s2829_s24 + $0x4c] ss:$16 sps:$4 sm:$0xff]   ;;  %v2360_v43 = vld [vmem:[%s2829_s24 + $0x40] ss:$16 sps:$4 sm:$0xff]   ;;  %v2361_v44 = vld [vmem:[%s2829_s24 + $0x48] ss:$16 sps:$4 sm:$0xff]  }
  0x68   : > { %v2362_v45 = vld [vmem:[%s2829_s24 + $0x64] ss:$16 sps:$4 sm:$0xff]   ;;  %v2364_v46 = vld [vmem:[%s2829_s24 + $0x6c] ss:$16 sps:$4 sm:$0xff]   ;;  %v2366_v47 = vld [vmem:[%s2829_s24 + $0x60] ss:$16 sps:$4 sm:$0xff]  }
  0x69   : > { %v2367_v48 = vld [vmem:[%s2829_s24 + $0x68] ss:$16 sps:$4 sm:$0xff]   ;;  %v2368_v49 = vld [vmem:[%s2829_s24 + $0x84] ss:$16 sps:$4 sm:$0xff]   ;;  %v2370_v50 = vld [vmem:[%s2829_s24 + $0x8c] ss:$16 sps:$4 sm:$0xff]  }
  0x6a   : > { %1176 = vmatpush1.bf16.msra.mxu0 %v2354_v39  ;;  %1402 = vmatpush1.bf16.msra.mxu1 %v2355_v40  ;;  %v2372_v51 = vld [vmem:[%s2829_s24 + $0x80] ss:$16 sps:$4 sm:$0xff]   ;;  %v2373_v52 = vld [vmem:[%s2829_s24 + $0x88] ss:$16 sps:$4 sm:$0xff]   ;;  %v2374_v53 = vld [vmem:[%s2829_s24 + $0xa4] ss:$16 sps:$4 sm:$0xff]  }
  0x6b   : > { %1177 = vmatprep.subr.bf16.mxu0 %v2356_v41  ;;  %1403 = vmatprep.subr.bf16.mxu1 %v2358_v42  ;;  %v2376_v54 = vld [vmem:[%s2829_s24 + $0xac] ss:$16 sps:$4 sm:$0xff]   ;;  %v2378_v55 = vld [vmem:[%s2829_s24 + $0xa0] ss:$16 sps:$4 sm:$0xff]   ;;  %v2379_v56 = vld [vmem:[%s2829_s24 + $0xa8] ss:$16 sps:$4 sm:$0xff]  }
  0x6c   : > { %v2380_v57 = vld [vmem:[%s2829_s24 + $0xc4] ss:$16 sps:$4 sm:$0xff]   ;;  %v2382_v58 = vld [vmem:[%s2829_s24 + $0xcc] ss:$16 sps:$4 sm:$0xff]   ;;  %v2384_v59 = vld [vmem:[%s2829_s24 + $0xc0] ss:$16 sps:$4 sm:$0xff]  }
  0x6d   : > { %v2385_v60 = vld [vmem:[%s2829_s24 + $0xc8] ss:$16 sps:$4 sm:$0xff]   ;;  %v2386_v61 = vld [vmem:[%s2829_s24 + $0xe4] ss:$16 sps:$4 sm:$0xff]   ;;  %v2388_v62 = vld [vmem:[%s2829_s24 + $0xec] ss:$16 sps:$4 sm:$0xff]  }
  0x6e   : > { %1178 = vmatpush1.bf16.msra.mxu0 %v2360_v43  ;;  %1404 = vmatpush1.bf16.msra.mxu1 %v2361_v44  ;;  %v2390_v63 = vld [vmem:[%s2829_s24 + $0xe0] ss:$16 sps:$4 sm:$0xff]   ;;  %v2391_v0 = vld [vmem:[%s2829_s24 + $0xe8] ss:$16 sps:$4 sm:$0xff]   ;;  %v2392_v1 = vld [vmem:[%s2829_s24 + $0x104] ss:$16 sps:$4 sm:$0xff]  }
  0x6f   : > { %1179 = vmatprep.subr.bf16.mxu0 %v2362_v45  ;;  %1405 = vmatprep.subr.bf16.mxu1 %v2364_v46  ;;  %v2394_v2 = vld [vmem:[%s2829_s24 + $0x10c] ss:$16 sps:$4 sm:$0xff]   ;;  %v2396_v3 = vld [vmem:[%s2829_s24 + $0x100] ss:$16 sps:$4 sm:$0xff]   ;;  %v2397_v4 = vld [vmem:[%s2829_s24 + $0x108] ss:$16 sps:$4 sm:$0xff]  }
  0x70   : > { %v2398_v5 = vld [vmem:[%s2829_s24 + $0x124] ss:$16 sps:$4 sm:$0xff]   ;;  %v2400_v6 = vld [vmem:[%s2829_s24 + $0x12c] ss:$16 sps:$4 sm:$0xff]   ;;  %v2402_v7 = vld [vmem:[%s2829_s24 + $0x120] ss:$16 sps:$4 sm:$0xff]  }
  0x71   : > { %v2403_v8 = vld [vmem:[%s2829_s24 + $0x128] ss:$16 sps:$4 sm:$0xff]   ;;  %v2404_v9 = vld [vmem:[%s2829_s24 + $0x144] ss:$16 sps:$4 sm:$0xff]   ;;  %v2406_v10 = vld [vmem:[%s2829_s24 + $0x14c] ss:$16 sps:$4 sm:$0xff]  }
  0x72   : > { %1180 = vmatpush1.bf16.msra.mxu0 %v2366_v47  ;;  %1406 = vmatpush1.bf16.msra.mxu1 %v2367_v48  ;;  %v2408_v11 = vld [vmem:[%s2829_s24 + $0x140] ss:$16 sps:$4 sm:$0xff]   ;;  %v2409_v12 = vld [vmem:[%s2829_s24 + $0x148] ss:$16 sps:$4 sm:$0xff]   ;;  %v2410_v13 = vld [vmem:[%s2829_s24 + $0x164] ss:$16 sps:$4 sm:$0xff]  }
  0x73   : > { %1181 = vmatprep.subr.bf16.mxu0 %v2368_v49  ;;  %1407 = vmatprep.subr.bf16.mxu1 %v2370_v50  ;;  %v2412_v14 = vld [vmem:[%s2829_s24 + $0x16c] ss:$16 sps:$4 sm:$0xff]   ;;  %v2414_v15 = vld [vmem:[%s2829_s24 + $0x160] ss:$16 sps:$4 sm:$0xff]   ;;  %v2415_v16 = vld [vmem:[%s2829_s24 + $0x168] ss:$16 sps:$4 sm:$0xff]  }
  0x74   : > { %v2442_v17 = vld [vmem:[%s2831_s26 + $0x4] ss:$12 sps:$4 sm:$0xff]   ;;  %v2418_v19 = vld [vmem:[%s2829_s24 + $0x18c] ss:$16 sps:$4 sm:$0xff]   ;;  %v2421_v21 = vld [vmem:[%s2829_s24 + $0x188] ss:$16 sps:$4 sm:$0xff]  }
  0x75   : > { %v2416_v18 = vld [vmem:[%s2829_s24 + $0x184] ss:$16 sps:$4 sm:$0xff]   ;;  %1205 = vmatprep.mubr.bf16.mxu0 %v2442_v17  ;;  %1431 = vmatprep.mubr.bf16.mxu1 %v2442_v17  ;;  %v2420_v20 = vld [vmem:[%s2829_s24 + $0x180] ss:$16 sps:$4 sm:$0xff]   ;;  %v2424_v23 = vld [vmem:[%s2829_s24 + $0x1ac] ss:$16 sps:$4 sm:$0xff]  }
  0x76   : > { %1182 = vmatpush1.bf16.msra.mxu0 %v2372_v51  ;;  %1408 = vmatpush1.bf16.msra.mxu1 %v2373_v52  ;;  %v2422_v22 = vld [vmem:[%s2829_s24 + $0x1a4] ss:$16 sps:$4 sm:$0xff]   ;;  %v2426_v24 = vld [vmem:[%s2829_s24 + $0x1a0] ss:$16 sps:$4 sm:$0xff]   ;;  %v2427_v25 = vld [vmem:[%s2829_s24 + $0x1a8] ss:$16 sps:$4 sm:$0xff]  }
  0x77   : > { %1183 = vmatprep.subr.bf16.mxu0 %v2374_v53  ;;  %1409 = vmatprep.subr.bf16.mxu1 %v2376_v54  ;;  %v2428_v26 = vld [vmem:[%s2829_s24 + $0x1c4] ss:$16 sps:$4 sm:$0xff]   ;;  %v2430_v27 = vld [vmem:[%s2829_s24 + $0x1cc] ss:$16 sps:$4 sm:$0xff]   ;;  %v2432_v28 = vld [vmem:[%s2829_s24 + $0x1c0] ss:$16 sps:$4 sm:$0xff]  }
  0x78   : > { %v2433_v29 = vld [vmem:[%s2829_s24 + $0x1c8] ss:$16 sps:$4 sm:$0xff]   ;;  %v2434_v30 = vld [vmem:[%s2829_s24 + $0x1e4] ss:$16 sps:$4 sm:$0xff]   ;;  %v2436_v31 = vld [vmem:[%s2829_s24 + $0x1ec] ss:$16 sps:$4 sm:$0xff]  }
  0x79   : > { %v2438_v32 = vld [vmem:[%s2829_s24 + $0x1e0] ss:$16 sps:$4 sm:$0xff]   ;;  %v2439_v33 = vld [vmem:[%s2829_s24 + $0x1e8] ss:$16 sps:$4 sm:$0xff]   ;;  %v2445_v34 = vld [vmem:[%s2829_s24 + $0x204] ss:$16 sps:$4 sm:$0xff]  }
  0x7a   : > { %1184 = vmatpush1.bf16.msra.mxu0 %v2378_v55  ;;  %1410 = vmatpush1.bf16.msra.mxu1 %v2379_v56  ;;  %v2448_v35 = vld [vmem:[%s2829_s24 + $0x20c] ss:$16 sps:$4 sm:$0xff]   ;;  %v2443_v37 = vld [vmem:[%s2829_s24 + $0x200] ss:$16 sps:$4 sm:$0xff]   ;;  %v2446_v38 = vld [vmem:[%s2829_s24 + $0x208] ss:$16 sps:$4 sm:$0xff]  }
  0x7b   : > { %1185 = vmatprep.subr.bf16.mxu0 %v2380_v57  ;;  %1411 = vmatprep.subr.bf16.mxu1 %v2382_v58  ;;  %v2440_v36 = vld [vmem:[%s2831_s26] ss:$12 sps:$4 sm:$0xff]   ;;  %v2449_v39 = vld [vmem:[%s2831_s26 + $0x1c] ss:$12 sps:$4 sm:$0xff]   ;;  %v2454_v40 = vld [vmem:[%s2829_s24 + $0x224] ss:$16 sps:$4 sm:$0xff]  }
  0x7c   : > { %v2457_v41 = vld [vmem:[%s2829_s24 + $0x22c] ss:$16 sps:$4 sm:$0xff]   ;;  %v2452_v42 = vld [vmem:[%s2829_s24 + $0x220] ss:$16 sps:$4 sm:$0xff]   ;;  %v2455_v43 = vld [vmem:[%s2829_s24 + $0x228] ss:$16 sps:$4 sm:$0xff]  }
  0x7d   : > { %v2463_v44 = vld [vmem:[%s2829_s24 + $0x244] ss:$16 sps:$4 sm:$0xff]   ;;  %v2466_v45 = vld [vmem:[%s2829_s24 + $0x24c] ss:$16 sps:$4 sm:$0xff]   ;;  %v2461_v48 = vld [vmem:[%s2829_s24 + $0x240] ss:$16 sps:$4 sm:$0xff]  }
  0x7e   : > { %1186 = vmatpush1.bf16.msra.mxu0 %v2384_v59  ;;  %1412 = vmatpush1.bf16.msra.mxu1 %v2385_v60  ;;  %v2451_v46 = vld [vmem:[%s2831_s26 + $0x18] ss:$12 sps:$4 sm:$0xff]   ;;  %v2458_v47 = vld [vmem:[%s2831_s26 + $0x34] ss:$12 sps:$4 sm:$0xff]   ;;  %v2475_v51 = vld [vmem:[%s2829_s24 + $0x26c] ss:$16 sps:$4 sm:$0xff]  }
  0x7f   : > { %1187 = vmatprep.subr.bf16.mxu0 %v2386_v61  ;;  %1413 = vmatprep.subr.bf16.mxu1 %v2388_v62  ;;  %v2464_v49 = vld [vmem:[%s2829_s24 + $0x248] ss:$16 sps:$4 sm:$0xff]   ;;  %v2472_v50 = vld [vmem:[%s2829_s24 + $0x264] ss:$16 sps:$4 sm:$0xff]   ;;  %v2470_v52 = vld [vmem:[%s2829_s24 + $0x260] ss:$16 sps:$4 sm:$0xff]  }
  0x80   : > { %v2473_v53 = vld [vmem:[%s2829_s24 + $0x268] ss:$16 sps:$4 sm:$0xff]   ;;  %v2460_v54 = vld [vmem:[%s2831_s26 + $0x30] ss:$12 sps:$4 sm:$0xff]   ;;  %v2481_v55 = vld [vmem:[%s2829_s24 + $0x284] ss:$16 sps:$4 sm:$0xff]  }
  0x81   : > { %v2484_v56 = vld [vmem:[%s2829_s24 + $0x28c] ss:$16 sps:$4 sm:$0xff]   ;;  %v2479_v58 = vld [vmem:[%s2829_s24 + $0x280] ss:$16 sps:$4 sm:$0xff]   ;;  %v2482_v59 = vld [vmem:[%s2829_s24 + $0x288] ss:$16 sps:$4 sm:$0xff]  }
  0x82   : > { %1188 = vmatpush1.bf16.msra.mxu0 %v2390_v63  ;;  %1414 = vmatpush1.bf16.msra.mxu1 %v2391_v0  ;;  %v2467_v57 = vld [vmem:[%s2831_s26 + $0x4c] ss:$12 sps:$4 sm:$0xff]   ;;  %v2490_v60 = vld [vmem:[%s2829_s24 + $0x2a4] ss:$16 sps:$4 sm:$0xff]   ;;  %v2488_v62 = vld [vmem:[%s2829_s24 + $0x2a0] ss:$16 sps:$4 sm:$0xff]  }
  0x83   : > { %1189 = vmatprep.subr.bf16.mxu0 %v2392_v1  ;;  %1415 = vmatprep.subr.bf16.mxu1 %v2394_v2  ;;  %v2493_v61 = vld [vmem:[%s2829_s24 + $0x2ac] ss:$16 sps:$4 sm:$0xff]   ;;  %v2491_v63 = vld [vmem:[%s2829_s24 + $0x2a8] ss:$16 sps:$4 sm:$0xff]   ;;  %v2499_v0 = vld [vmem:[%s2829_s24 + $0x2c4] ss:$16 sps:$4 sm:$0xff]  }
  0x84   : > { %v2502_v1 = vld [vmem:[%s2829_s24 + $0x2cc] ss:$16 sps:$4 sm:$0xff]   ;;  %v2469_v2 = vld [vmem:[%s2831_s26 + $0x48] ss:$12 sps:$4 sm:$0xff]   ;;  %v2633_v17 = vmov 0   ;;  %p2176_p5 = scmp.ne.s32.totalorder %s2614_s14, 2 }
  0x86   : > { %1190 = vmatpush1.bf16.msra.mxu0 %v2396_v3  ;;  %1416 = vmatpush1.bf16.msra.mxu1 %v2397_v4  ;;  %v2476_v3 = vld [vmem:[%s2831_s26 + $0x64] ss:$12 sps:$4 sm:$0xff]  }
  0x87   : > { %1191 = vmatprep.subr.bf16.mxu0 %v2398_v5  ;;  %1417 = vmatprep.subr.bf16.mxu1 %v2400_v6  ;;  %v2497_v4 = vld [vmem:[%s2829_s24 + $0x2c0] ss:$16 sps:$4 sm:$0xff]   ;;  %v2500_v5 = vld [vmem:[%s2829_s24 + $0x2c8] ss:$16 sps:$4 sm:$0xff]   ;;  %v2508_v6 = vld [vmem:[%s2829_s24 + $0x2e4] ss:$16 sps:$4 sm:$0xff]  }
  0x8a   : > { %1192 = vmatpush1.bf16.msra.mxu0 %v2402_v7  ;;  %1418 = vmatpush1.bf16.msra.mxu1 %v2403_v8  ;;  %v2511_v7 = vld [vmem:[%s2829_s24 + $0x2ec] ss:$16 sps:$4 sm:$0xff]   ;;  %v2506_v8 = vld [vmem:[%s2829_s24 + $0x2e0] ss:$16 sps:$4 sm:$0xff]  }
  0x8b   : > { %1193 = vmatprep.subr.bf16.mxu0 %v2404_v9  ;;  %1419 = vmatprep.subr.bf16.mxu1 %v2406_v10  ;;  %v2509_v9 = vld [vmem:[%s2829_s24 + $0x2e8] ss:$16 sps:$4 sm:$0xff]   ;;  %v2478_v10 = vld [vmem:[%s2831_s26 + $0x60] ss:$12 sps:$4 sm:$0xff]  }
  0x8e   : > { %1194 = vmatpush1.bf16.msra.mxu0 %v2408_v11  ;;  %1420 = vmatpush1.bf16.msra.mxu1 %v2409_v12  ;;  %v2485_v11 = vld [vmem:[%s2831_s26 + $0x7c] ss:$12 sps:$4 sm:$0xff]   ;;  %v2487_v12 = vld [vmem:[%s2831_s26 + $0x78] ss:$12 sps:$4 sm:$0xff]  }
  0x8f   : > { %1195 = vmatprep.subr.bf16.mxu0 %v2410_v13  ;;  %1421 = vmatprep.subr.bf16.mxu1 %v2412_v14  ;;  %v2494_v13 = vld [vmem:[%s2831_s26 + $0x94] ss:$12 sps:$4 sm:$0xff]   ;;  %v2496_v14 = vld [vmem:[%s2831_s26 + $0x90] ss:$12 sps:$4 sm:$0xff]  }
  0x92   : > { %1196 = vmatpush1.bf16.msra.mxu0 %v2414_v15  ;;  %1422 = vmatpush1.bf16.msra.mxu1 %v2415_v16  ;;  %v2503_v15 = vld [vmem:[%s2831_s26 + $0xac] ss:$12 sps:$4 sm:$0xff]   ;;  %v2505_v16 = vld [vmem:[%s2831_s26 + $0xa8] ss:$12 sps:$4 sm:$0xff]  }
  0x93   : > { %1197 = vmatprep.subr.bf16.mxu0 %v2416_v18  ;;  %1423 = vmatprep.subr.bf16.mxu1 %v2418_v19  ;;  %v2512_v18 = vld [vmem:[%s2831_s26 + $0x8] ss:$12 sps:$4 sm:$0xff]   ;;  %v2513_v19 = vld [vmem:[%s2831_s26 + $0x20] ss:$12 sps:$4 sm:$0xff]  }
  0x96   : > { %1198 = vmatpush1.bf16.msra.mxu0 %v2420_v20  ;;  %1424 = vmatpush1.bf16.msra.mxu1 %v2421_v21  ;;  %v2514_v20 = vld [vmem:[%s2831_s26 + $0x38] ss:$12 sps:$4 sm:$0xff]   ;;  %v2515_v21 = vld [vmem:[%s2831_s26 + $0x50] ss:$12 sps:$4 sm:$0xff]  }
  0x97   : > { %1199 = vmatprep.subr.bf16.mxu0 %v2422_v22  ;;  %1425 = vmatprep.subr.bf16.mxu1 %v2424_v23  ;;  %v2516_v22 = vld [vmem:[%s2831_s26 + $0x68] ss:$12 sps:$4 sm:$0xff]   ;;  %v2517_v23 = vld [vmem:[%s2831_s26 + $0x80] ss:$12 sps:$4 sm:$0xff]  }
  0x9a   : > { %1200 = vmatpush1.bf16.msra.mxu0 %v2426_v24  ;;  %1426 = vmatpush1.bf16.msra.mxu1 %v2427_v25  ;;  %v2518_v24 = vld [vmem:[%s2831_s26 + $0x98] ss:$12 sps:$4 sm:$0xff]   ;;  %v2519_v25 = vld [vmem:[%s2831_s26 + $0xb0] ss:$12 sps:$4 sm:$0xff]  }
  0x9b   : > { %1201 = vmatprep.subr.bf16.mxu0 %v2428_v26  ;;  %1427 = vmatprep.subr.bf16.mxu1 %v2430_v27  ;;  %v373_v26 = vld [vmem:[#allocation2] sm:$0xff]  ;;  %v375_v27 = vld [vmem:[#allocation2 + $0x10] sm:$0xff] }
  0x9e   : > { %1202 = vmatpush1.bf16.msra.mxu0 %v2432_v28  ;;  %1428 = vmatpush1.bf16.msra.mxu1 %v2433_v29  ;;  %v374_v28 = vld [vmem:[#allocation2 + $0x8] sm:$0xff]  ;;  %v376_v29 = vld [vmem:[#allocation2 + $0x18] sm:$0xff] }
  0x9f   : > { %1203 = vmatprep.subr.bf16.mxu0 %v2434_v30  ;;  %1429 = vmatprep.subr.bf16.mxu1 %v2436_v31 }
  0xa2   : > { %1204 = vmatpush1.bf16.msra.mxu0 %v2438_v32  ;;  %1430 = vmatpush1.bf16.msra.mxu1 %v2439_v33  ;;  %v377_v32 = vld [vmem:[#allocation2 + $0x20] sm:$0xff]  ;;  %v379_v33 = vld [vmem:[#allocation2 + $0x30] sm:$0xff] }
  0xa3   : > { %1286 = vmatprep.subr.bf16.mxu0 %v2445_v34  ;;  %1512 = vmatprep.subr.bf16.mxu1 %v2448_v35 }
  0xa5   : > { %1206 = vmatmul.mubr.bf16.vlgmr.msra.gmra.mrb[0].mxu0 %v2440_v36  ;;  %1432 = vmatmul.mubr.bf16.vlgmr.msra.gmra.mrb[0].mxu1 %v2440_v36 }
  0xa6   : > { %1287 = vmatpush1.bf16.msra.mxu0 %v2443_v37  ;;  %1513 = vmatpush1.bf16.msra.mxu1 %v2446_v38  ;;  %v378_v38 = vld [vmem:[#allocation2 + $0x28] sm:$0xff] }
  0xa7   : > { %1215 = vmatprep.mubr.bf16.mxu0 %v2449_v39  ;;  %1441 = vmatprep.mubr.bf16.mxu1 %v2449_v39  ;;  %v380_v39 = vld [vmem:[#allocation2 + $0x38] sm:$0xff] }
  0xa8   : > { %1288 = vmatprep.subr.bf16.mxu0 %v2454_v40  ;;  %1514 = vmatprep.subr.bf16.mxu1 %v2457_v41 }
  0xaa   : > { %1289 = vmatpush1.bf16.msra.mxu0 %v2452_v42  ;;  %1515 = vmatpush1.bf16.msra.mxu1 %v2455_v43 }
  0xab   : > { %1290 = vmatprep.subr.bf16.mxu0 %v2463_v44  ;;  %1516 = vmatprep.subr.bf16.mxu1 %v2466_v45 }
  0xad   : > { %1216 = vmatmul.mubr.bf16.gmra.mrb[4].mxu0 %v2451_v46  ;;  %1442 = vmatmul.mubr.bf16.gmra.mrb[4].mxu1 %v2451_v46 }
  0xae   : > { %1225 = vmatprep.mubr.bf16.mxu0 %v2458_v47  ;;  %1451 = vmatprep.mubr.bf16.mxu1 %v2458_v47 }
  0xaf   : > { %1291 = vmatpush1.bf16.msra.mxu0 %v2461_v48  ;;  %1517 = vmatpush1.bf16.msra.mxu1 %v2464_v49 }
  0xb0   : > { %1292 = vmatprep.subr.bf16.mxu0 %v2472_v50  ;;  %1518 = vmatprep.subr.bf16.mxu1 %v2475_v51  ;;  %v381_v50 = vld [vmem:[#allocation2 + $0x40] sm:$0xff]  ;;  %v383_v51 = vld [vmem:[#allocation2 + $0x50] sm:$0xff] }
  0xb3   : > { %1293 = vmatpush1.bf16.msra.mxu0 %v2470_v52  ;;  %1519 = vmatpush1.bf16.msra.mxu1 %v2473_v53  ;;  %v382_v52 = vld [vmem:[#allocation2 + $0x48] sm:$0xff]  ;;  %v384_v53 = vld [vmem:[#allocation2 + $0x58] sm:$0xff] }
  0xb4   : > { %1294 = vmatprep.subr.bf16.mxu0 %v2481_v55  ;;  %1520 = vmatprep.subr.bf16.mxu1 %v2484_v56  ;;  %v385_v56 = vld [vmem:[#allocation2 + $0x60] sm:$0xff] }
  0xb5   : > { %1226 = vmatmul.mubr.bf16.gmra.mrb[8].mxu0 %v2460_v54  ;;  %1452 = vmatmul.mubr.bf16.gmra.mrb[8].mxu1 %v2460_v54 }
  0xb6   : > { %1235 = vmatprep.mubr.bf16.mxu0 %v2467_v57  ;;  %1461 = vmatprep.mubr.bf16.mxu1 %v2467_v57  ;;  %v387_v57 = vld [vmem:[#allocation2 + $0x70] sm:$0xff] }
  0xb7   : > { %1295 = vmatpush1.bf16.msra.mxu0 %v2479_v58  ;;  %1521 = vmatpush1.bf16.msra.mxu1 %v2482_v59 }
  0xb8   : > { %1296 = vmatprep.subr.bf16.mxu0 %v2490_v60  ;;  %1522 = vmatprep.subr.bf16.mxu1 %v2493_v61 }
  0xbb   : > { %1297 = vmatpush1.bf16.msra.mxu0 %v2488_v62  ;;  %1523 = vmatpush1.bf16.msra.mxu1 %v2491_v63  ;;  %v386_v62 = vld [vmem:[#allocation2 + $0x68] sm:$0xff]  ;;  %v388_v63 = vld [vmem:[#allocation2 + $0x78] sm:$0xff] }
  0xbc   : > { %1298 = vmatprep.subr.bf16.mxu0 %v2499_v0  ;;  %1524 = vmatprep.subr.bf16.mxu1 %v2502_v1 }
  0xbd   : > { %1236 = vmatmul.mubr.bf16.gmra.mrb[12].mxu0 %v2469_v2  ;;  %1462 = vmatmul.mubr.bf16.gmra.mrb[12].mxu1 %v2469_v2 }
  0xbe   : > { %1245 = vmatprep.mubr.bf16.mxu0 %v2476_v3  ;;  %1471 = vmatprep.mubr.bf16.mxu1 %v2476_v3 }
  0xbf   : > { %1299 = vmatpush1.bf16.msra.mxu0 %v2497_v4  ;;  %1525 = vmatpush1.bf16.msra.mxu1 %v2500_v5 }
  0xc0   : > { %1300 = vmatprep.subr.bf16.mxu0 %v2508_v6  ;;  %1526 = vmatprep.subr.bf16.mxu1 %v2511_v7 }
  0xc3   : > { %1301 = vmatpush1.bf16.msra.mxu0 %v2506_v8  ;;  %1527 = vmatpush1.bf16.msra.mxu1 %v2509_v9 }
  0xc5   : > { %1246 = vmatmul.mubr.bf16.gmra.mrb[16].mxu0 %v2478_v10  ;;  %1472 = vmatmul.mubr.bf16.gmra.mrb[16].mxu1 %v2478_v10  ;;  %v389_v10 = vld [vmem:[#allocation2 + $0x80] sm:$0xff] }
  0xc6   : > { %1255 = vmatprep.mubr.bf16.mxu0 %v2485_v11  ;;  %1481 = vmatprep.mubr.bf16.mxu1 %v2485_v11  ;;  %v391_v11 = vld [vmem:[#allocation2 + $0x90] sm:$0xff] }
  0xcd   : > { %1256 = vmatmul.mubr.bf16.gmra.mrb[20].mxu0 %v2487_v12  ;;  %1482 = vmatmul.mubr.bf16.gmra.mrb[20].mxu1 %v2487_v12  ;;  %v390_v12 = vld [vmem:[#allocation2 + $0x88] sm:$0xff] }
  0xce   : > { %1265 = vmatprep.mubr.bf16.mxu0 %v2494_v13  ;;  %1491 = vmatprep.mubr.bf16.mxu1 %v2494_v13  ;;  %v392_v13 = vld [vmem:[#allocation2 + $0x98] sm:$0xff] }
  0xd5   : > { %1266 = vmatmul.mubr.bf16.gmra.mrb[24].mxu0 %v2496_v14  ;;  %1492 = vmatmul.mubr.bf16.gmra.mrb[24].mxu1 %v2496_v14 }
  0xd6   : > { %1275 = vmatprep.mubr.bf16.mxu0 %v2503_v15  ;;  %1501 = vmatprep.mubr.bf16.mxu1 %v2503_v15 }
  0xdd   : > { %1276 = vmatmul.mubr.bf16.gmra.mrb[28].mxu0 %v2505_v16  ;;  %1502 = vmatmul.mubr.bf16.gmra.mrb[28].mxu1 %v2505_v16  ;;  %v393_v16 = vld [vmem:[#allocation2 + $0xa0] sm:$0xff] }
  0xde   : > { %1318 = vmatprep.mubr.bf16.mxu0 %v2633_v17  ;;  %1544 = vmatprep.mubr.bf16.mxu1 %v2633_v17 }
  0xe5   : > { %1319 = vmatmul.mubr.bf16.vlgmr.msra.gmra.mrb[0].mxu0 %v2512_v18  ;;  %1545 = vmatmul.mubr.bf16.vlgmr.msra.gmra.mrb[0].mxu1 %v2512_v18 }
  0xe6   : > { %1328 = vmatprep.mubr.bf16.mxu0 %v2633_v17  ;;  %1554 = vmatprep.mubr.bf16.mxu1 %v2633_v17 }
  0xed   : > { %1329 = vmatmul.mubr.bf16.gmra.mrb[4].mxu0 %v2513_v19  ;;  %1555 = vmatmul.mubr.bf16.gmra.mrb[4].mxu1 %v2513_v19 }
  0xee   : > { %1338 = vmatprep.mubr.bf16.mxu0 %v2633_v17  ;;  %1564 = vmatprep.mubr.bf16.mxu1 %v2633_v17 }
  0xf5   : > { %1339 = vmatmul.mubr.bf16.gmra.mrb[8].mxu0 %v2514_v20  ;;  %1565 = vmatmul.mubr.bf16.gmra.mrb[8].mxu1 %v2514_v20 }
  0xf6   : > { %1348 = vmatprep.mubr.bf16.mxu0 %v2633_v17  ;;  %1574 = vmatprep.mubr.bf16.mxu1 %v2633_v17 }
  0xfd   : > { %1349 = vmatmul.mubr.bf16.gmra.mrb[12].mxu0 %v2515_v21  ;;  %1575 = vmatmul.mubr.bf16.gmra.mrb[12].mxu1 %v2515_v21 }
  0xfe   : > { %1358 = vmatprep.mubr.bf16.mxu0 %v2633_v17  ;;  %1584 = vmatprep.mubr.bf16.mxu1 %v2633_v17 }
 0x105   : > { %1359 = vmatmul.mubr.bf16.gmra.mrb[16].mxu0 %v2516_v22  ;;  %1585 = vmatmul.mubr.bf16.gmra.mrb[16].mxu1 %v2516_v22  ;;  %v394_v22 = vld [vmem:[#allocation2 + $0xa8] sm:$0xff] }
 0x106   : > { %1368 = vmatprep.mubr.bf16.mxu0 %v2633_v17  ;;  %1594 = vmatprep.mubr.bf16.mxu1 %v2633_v17 }
 0x10d   : > { %1369 = vmatmul.mubr.bf16.gmra.mrb[20].mxu0 %v2517_v23  ;;  %1595 = vmatmul.mubr.bf16.gmra.mrb[20].mxu1 %v2517_v23  ;;  %v396_v23 = vld [vmem:[#allocation2 + $0xb8] sm:$0xff] }
 0x10e   : > { %1378 = vmatprep.mubr.bf16.mxu0 %v2633_v17  ;;  %1604 = vmatprep.mubr.bf16.mxu1 %v2633_v17 }
 0x115   : > { %1379 = vmatmul.mubr.bf16.gmra.mrb[24].mxu0 %v2518_v24  ;;  %1605 = vmatmul.mubr.bf16.gmra.mrb[24].mxu1 %v2518_v24 }
 0x116   : > { %1388 = vmatprep.mubr.bf16.mxu0 %v2633_v17  ;;  %1614 = vmatprep.mubr.bf16.mxu1 %v2633_v17  ;;  %v395_v17 = vld [vmem:[#allocation2 + $0xb0] sm:$0xff] }
 0x11d   : > { %1389 = vmatmul.mubr.bf16.gmra.mrb[28].mxu0 %v2519_v25  ;;  %1615 = vmatmul.mubr.bf16.gmra.mrb[28].mxu1 %v2519_v25 }
 0x1b8   : > { %v1320_v30 = vpop.f32.mrb[0].mxu0  ;;  %v1546_v31 = vpop.f32.mrb[0].mxu1 }
 0x1b9   : > { %v1625_v34 = vadd.f32 %v1320_v30, %v373_v26  ;;  %v1627_v35 = vadd.f32 %v1546_v31, %v375_v27  ;;  %v1322_v36 = vpop.f32.mrb[1].mxu0  ;;  %v1548_v37 = vpop.f32.mrb[1].mxu1 }
 0x1ba   : > { %v1626_v40 = vadd.f32 %v1322_v36, %v374_v28  ;;  %v1628_v41 = vadd.f32 %v1548_v37, %v376_v29  ;;  %v1324_v42 = vpop.f32.mrb[2].mxu0  ;;  %v1550_v43 = vpop.f32.mrb[2].mxu1  ;;  %v398_v36 = vld [vmem:[#allocation2 + $0xc8] sm:$0xff]  ;;  %v400_v37 = vld [vmem:[#allocation2 + $0xd8] sm:$0xff] }
 0x1bb   : > { %1689 = vst [vmem:[#allocation2] sm:$0xff] %v1625_v34  ;;  %1691 = vst [vmem:[#allocation2 + $0x10] sm:$0xff] %v1627_v35  ;;  %v1629_v44 = vadd.f32 %v1324_v42, %v377_v32  ;;  %v1631_v45 = vadd.f32 %v1550_v43, %v379_v33  ;;  %v1326_v46 = vpop.f32.mrb[3].mxu0  ;;  %v1552_v47 = vpop.f32.mrb[3].mxu1  ;;  %v397_v34 = vld [vmem:[#allocation2 + $0xc0] sm:$0xff]  ;;  %v399_v35 = vld [vmem:[#allocation2 + $0xd0] sm:$0xff] }
 0x1bc   : > { %1690 = vst [vmem:[#allocation2 + $0x8] sm:$0xff] %v1626_v40  ;;  %1692 = vst [vmem:[#allocation2 + $0x18] sm:$0xff] %v1628_v41  ;;  %v1630_v48 = vadd.f32 %v1326_v46, %v378_v38  ;;  %v1632_v49 = vadd.f32 %v1552_v47, %v380_v39  ;;  %v401_v40 = vld [vmem:[#allocation2 + $0xe0] sm:$0xff]  ;;  %v403_v41 = vld [vmem:[#allocation2 + $0xf0] sm:$0xff] }
 0x1bd   : > { %1693 = vst [vmem:[#allocation2 + $0x20] sm:$0xff] %v1629_v44  ;;  %1695 = vst [vmem:[#allocation2 + $0x30] sm:$0xff] %v1631_v45  ;;  %v402_v46 = vld [vmem:[#allocation2 + $0xe8] sm:$0xff]  ;;  %v404_v47 = vld [vmem:[#allocation2 + $0xf8] sm:$0xff] }
 0x1be   : > { %1694 = vst [vmem:[#allocation2 + $0x28] sm:$0xff] %v1630_v48  ;;  %1696 = vst [vmem:[#allocation2 + $0x38] sm:$0xff] %v1632_v49 }
 0x1c0   : > { %v1330_v54 = vpop.f32.mrb[4].mxu0  ;;  %v1556_v55 = vpop.f32.mrb[4].mxu1 }
 0x1c1   : > { %v1633_v58 = vadd.f32 %v1330_v54, %v381_v50  ;;  %v1635_v59 = vadd.f32 %v1556_v55, %v383_v51  ;;  %v1332_v60 = vpop.f32.mrb[5].mxu0  ;;  %v1558_v61 = vpop.f32.mrb[5].mxu1 }
 0x1c2   : > { %v1634_v0 = vadd.f32 %v1332_v60, %v382_v52  ;;  %v1636_v1 = vadd.f32 %v1558_v61, %v384_v53  ;;  %v1334_v2 = vpop.f32.mrb[6].mxu0  ;;  %v1560_v3 = vpop.f32.mrb[6].mxu1  ;;  %v406_v60 = vld [vmem:[#allocation2 + $0x108] sm:$0xff]  ;;  %v408_v61 = vld [vmem:[#allocation2 + $0x118] sm:$0xff] }
 0x1c3   : > { %1697 = vst [vmem:[#allocation2 + $0x40] sm:$0xff] %v1633_v58  ;;  %1699 = vst [vmem:[#allocation2 + $0x50] sm:$0xff] %v1635_v59  ;;  %v1637_v4 = vadd.f32 %v1334_v2, %v385_v56  ;;  %v1639_v5 = vadd.f32 %v1560_v3, %v387_v57  ;;  %v1336_v6 = vpop.f32.mrb[7].mxu0  ;;  %v1562_v7 = vpop.f32.mrb[7].mxu1  ;;  %v405_v58 = vld [vmem:[#allocation2 + $0x100] sm:$0xff]  ;;  %v407_v59 = vld [vmem:[#allocation2 + $0x110] sm:$0xff] }
 0x1c4   : > { %1698 = vst [vmem:[#allocation2 + $0x48] sm:$0xff] %v1634_v0  ;;  %1700 = vst [vmem:[#allocation2 + $0x58] sm:$0xff] %v1636_v1  ;;  %v1638_v8 = vadd.f32 %v1336_v6, %v386_v62  ;;  %v1640_v9 = vadd.f32 %v1562_v7, %v388_v63  ;;  %v409_v0 = vld [vmem:[#allocation2 + $0x120] sm:$0xff]  ;;  %v411_v1 = vld [vmem:[#allocation2 + $0x130] sm:$0xff] }
 0x1c5   : > { %1701 = vst [vmem:[#allocation2 + $0x60] sm:$0xff] %v1637_v4  ;;  %1703 = vst [vmem:[#allocation2 + $0x70] sm:$0xff] %v1639_v5  ;;  %v410_v6 = vld [vmem:[#allocation2 + $0x128] sm:$0xff]  ;;  %v412_v7 = vld [vmem:[#allocation2 + $0x138] sm:$0xff] }
 0x1c6   : > { %1702 = vst [vmem:[#allocation2 + $0x68] sm:$0xff] %v1638_v8  ;;  %1704 = vst [vmem:[#allocation2 + $0x78] sm:$0xff] %v1640_v9 }
 0x1c8   : > { %v1340_v14 = vpop.f32.mrb[8].mxu0  ;;  %v1566_v15 = vpop.f32.mrb[8].mxu1 }
 0x1c9   : > { %v1641_v18 = vadd.f32 %v1340_v14, %v389_v10  ;;  %v1643_v19 = vadd.f32 %v1566_v15, %v391_v11  ;;  %v1342_v20 = vpop.f32.mrb[9].mxu0  ;;  %v1568_v21 = vpop.f32.mrb[9].mxu1 }
 0x1ca   : > { %v1642_v24 = vadd.f32 %v1342_v20, %v390_v12  ;;  %v1644_v25 = vadd.f32 %v1568_v21, %v392_v13  ;;  %v1344_v26 = vpop.f32.mrb[10].mxu0  ;;  %v1570_v27 = vpop.f32.mrb[10].mxu1  ;;  %v414_v20 = vld [vmem:[#allocation2 + $0x148] sm:$0xff]  ;;  %v416_v21 = vld [vmem:[#allocation2 + $0x158] sm:$0xff] }
 0x1cb   : > { %1705 = vst [vmem:[#allocation2 + $0x80] sm:$0xff] %v1641_v18  ;;  %1707 = vst [vmem:[#allocation2 + $0x90] sm:$0xff] %v1643_v19  ;;  %v1645_v28 = vadd.f32 %v1344_v26, %v393_v16  ;;  %v1647_v29 = vadd.f32 %v1570_v27, %v395_v17  ;;  %v1346_v30 = vpop.f32.mrb[11].mxu0  ;;  %v1572_v31 = vpop.f32.mrb[11].mxu1  ;;  %v413_v18 = vld [vmem:[#allocation2 + $0x140] sm:$0xff]  ;;  %v415_v19 = vld [vmem:[#allocation2 + $0x150] sm:$0xff] }
 0x1cc   : > { %1706 = vst [vmem:[#allocation2 + $0x88] sm:$0xff] %v1642_v24  ;;  %1708 = vst [vmem:[#allocation2 + $0x98] sm:$0xff] %v1644_v25  ;;  %v1646_v32 = vadd.f32 %v1346_v30, %v394_v22  ;;  %v1648_v33 = vadd.f32 %v1572_v31, %v396_v23  ;;  %v417_v24 = vld [vmem:[#allocation2 + $0x160] sm:$0xff]  ;;  %v419_v25 = vld [vmem:[#allocation2 + $0x170] sm:$0xff] }
 0x1cd   : > { %1709 = vst [vmem:[#allocation2 + $0xa0] sm:$0xff] %v1645_v28  ;;  %1711 = vst [vmem:[#allocation2 + $0xb0] sm:$0xff] %v1647_v29  ;;  %v418_v30 = vld [vmem:[#allocation2 + $0x168] sm:$0xff]  ;;  %v420_v31 = vld [vmem:[#allocation2 + $0x178] sm:$0xff] }
 0x1ce   : > { %1710 = vst [vmem:[#allocation2 + $0xa8] sm:$0xff] %v1646_v32  ;;  %1712 = vst [vmem:[#allocation2 + $0xb8] sm:$0xff] %v1648_v33 }
 0x1d0   : > { %v1350_v38 = vpop.f32.mrb[12].mxu0  ;;  %v1576_v39 = vpop.f32.mrb[12].mxu1 }
 0x1d1   : > { %v1649_v42 = vadd.f32 %v1350_v38, %v397_v34  ;;  %v1651_v43 = vadd.f32 %v1576_v39, %v399_v35  ;;  %v1352_v44 = vpop.f32.mrb[13].mxu0  ;;  %v1578_v45 = vpop.f32.mrb[13].mxu1 }
 0x1d2   : > { %v1650_v48 = vadd.f32 %v1352_v44, %v398_v36  ;;  %v1652_v49 = vadd.f32 %v1578_v45, %v400_v37  ;;  %v1354_v50 = vpop.f32.mrb[14].mxu0  ;;  %v1580_v51 = vpop.f32.mrb[14].mxu1  ;;  %v422_v44 = vld [vmem:[#allocation2 + $0x188] sm:$0xff]  ;;  %v424_v45 = vld [vmem:[#allocation2 + $0x198] sm:$0xff] }
 0x1d3   : > { %1713 = vst [vmem:[#allocation2 + $0xc0] sm:$0xff] %v1649_v42  ;;  %1715 = vst [vmem:[#allocation2 + $0xd0] sm:$0xff] %v1651_v43  ;;  %v1653_v52 = vadd.f32 %v1354_v50, %v401_v40  ;;  %v1655_v53 = vadd.f32 %v1580_v51, %v403_v41  ;;  %v1356_v54 = vpop.f32.mrb[15].mxu0  ;;  %v1582_v55 = vpop.f32.mrb[15].mxu1  ;;  %v421_v42 = vld [vmem:[#allocation2 + $0x180] sm:$0xff]  ;;  %v423_v43 = vld [vmem:[#allocation2 + $0x190] sm:$0xff] }
 0x1d4   : > { %1714 = vst [vmem:[#allocation2 + $0xc8] sm:$0xff] %v1650_v48  ;;  %1716 = vst [vmem:[#allocation2 + $0xd8] sm:$0xff] %v1652_v49  ;;  %v1654_v56 = vadd.f32 %v1356_v54, %v402_v46  ;;  %v1656_v57 = vadd.f32 %v1582_v55, %v404_v47  ;;  %v425_v48 = vld [vmem:[#allocation2 + $0x1a0] sm:$0xff]  ;;  %v427_v49 = vld [vmem:[#allocation2 + $0x1b0] sm:$0xff] }
 0x1d5   : > { %1717 = vst [vmem:[#allocation2 + $0xe0] sm:$0xff] %v1653_v52  ;;  %1719 = vst [vmem:[#allocation2 + $0xf0] sm:$0xff] %v1655_v53  ;;  %v426_v54 = vld [vmem:[#allocation2 + $0x1a8] sm:$0xff]  ;;  %v428_v55 = vld [vmem:[#allocation2 + $0x1b8] sm:$0xff] }
 0x1d6   : > { %1718 = vst [vmem:[#allocation2 + $0xe8] sm:$0xff] %v1654_v56  ;;  %1720 = vst [vmem:[#allocation2 + $0xf8] sm:$0xff] %v1656_v57 }
 0x1d8   : > { %v1360_v62 = vpop.f32.mrb[16].mxu0  ;;  %v1586_v63 = vpop.f32.mrb[16].mxu1 }
 0x1d9   : > { %v1657_v2 = vadd.f32 %v1360_v62, %v405_v58  ;;  %v1659_v3 = vadd.f32 %v1586_v63, %v407_v59  ;;  %v1362_v4 = vpop.f32.mrb[17].mxu0  ;;  %v1588_v5 = vpop.f32.mrb[17].mxu1 }
 0x1da   : > { %v1658_v8 = vadd.f32 %v1362_v4, %v406_v60  ;;  %v1660_v9 = vadd.f32 %v1588_v5, %v408_v61  ;;  %v1364_v10 = vpop.f32.mrb[18].mxu0  ;;  %v1590_v11 = vpop.f32.mrb[18].mxu1  ;;  %v430_v4 = vld [vmem:[#allocation2 + $0x1c8] sm:$0xff]  ;;  %v432_v5 = vld [vmem:[#allocation2 + $0x1d8] sm:$0xff] }
 0x1db   : > { %1721 = vst [vmem:[#allocation2 + $0x100] sm:$0xff] %v1657_v2  ;;  %1723 = vst [vmem:[#allocation2 + $0x110] sm:$0xff] %v1659_v3  ;;  %v1661_v12 = vadd.f32 %v1364_v10, %v409_v0  ;;  %v1663_v13 = vadd.f32 %v1590_v11, %v411_v1  ;;  %v1366_v14 = vpop.f32.mrb[19].mxu0  ;;  %v1592_v15 = vpop.f32.mrb[19].mxu1  ;;  %v429_v2 = vld [vmem:[#allocation2 + $0x1c0] sm:$0xff]  ;;  %v431_v3 = vld [vmem:[#allocation2 + $0x1d0] sm:$0xff] }
 0x1dc   : > { %1722 = vst [vmem:[#allocation2 + $0x108] sm:$0xff] %v1658_v8  ;;  %1724 = vst [vmem:[#allocation2 + $0x118] sm:$0xff] %v1660_v9  ;;  %v1662_v16 = vadd.f32 %v1366_v14, %v410_v6  ;;  %v1664_v17 = vadd.f32 %v1592_v15, %v412_v7  ;;  %v433_v8 = vld [vmem:[#allocation2 + $0x1e0] sm:$0xff]  ;;  %v435_v9 = vld [vmem:[#allocation2 + $0x1f0] sm:$0xff] }
 0x1dd   : > { %1725 = vst [vmem:[#allocation2 + $0x120] sm:$0xff] %v1661_v12  ;;  %1727 = vst [vmem:[#allocation2 + $0x130] sm:$0xff] %v1663_v13  ;;  %v434_v14 = vld [vmem:[#allocation2 + $0x1e8] sm:$0xff]  ;;  %v436_v15 = vld [vmem:[#allocation2 + $0x1f8] sm:$0xff] }
 0x1de   : > { %1726 = vst [vmem:[#allocation2 + $0x128] sm:$0xff] %v1662_v16  ;;  %1728 = vst [vmem:[#allocation2 + $0x138] sm:$0xff] %v1664_v17 }
 0x1e0   : > { %v1370_v22 = vpop.f32.mrb[20].mxu0  ;;  %v1596_v23 = vpop.f32.mrb[20].mxu1 }
 0x1e1   : > { %v1665_v26 = vadd.f32 %v1370_v22, %v413_v18  ;;  %v1667_v27 = vadd.f32 %v1596_v23, %v415_v19  ;;  %v1372_v28 = vpop.f32.mrb[21].mxu0  ;;  %v1598_v29 = vpop.f32.mrb[21].mxu1 }
 0x1e2   : > { %v1666_v32 = vadd.f32 %v1372_v28, %v414_v20  ;;  %v1668_v33 = vadd.f32 %v1598_v29, %v416_v21  ;;  %v1374_v34 = vpop.f32.mrb[22].mxu0  ;;  %v1600_v35 = vpop.f32.mrb[22].mxu1  ;;  %v1759_v28 = vld [vmem:[#allocation2 + $0x10] sm:$0xff] (!%p2176_p5)  ;;  %v1760_v29 = vld [vmem:[#allocation2 + $0x18] sm:$0xff] (!%p2176_p5) }
 0x1e3   : > { %1729 = vst [vmem:[#allocation2 + $0x140] sm:$0xff] %v1665_v26  ;;  %1731 = vst [vmem:[#allocation2 + $0x150] sm:$0xff] %v1667_v27  ;;  %v1669_v36 = vadd.f32 %v1374_v34, %v417_v24  ;;  %v1671_v37 = vadd.f32 %v1600_v35, %v419_v25  ;;  %v1376_v38 = vpop.f32.mrb[23].mxu0  ;;  %v1602_v39 = vpop.f32.mrb[23].mxu1  ;;  %v1757_v26 = vld [vmem:[#allocation2] sm:$0xff] (!%p2176_p5)  ;;  %v1758_v27 = vld [vmem:[#allocation2 + $0x8] sm:$0xff] (!%p2176_p5) }
 0x1e4   : > { %1730 = vst [vmem:[#allocation2 + $0x148] sm:$0xff] %v1666_v32  ;;  %1732 = vst [vmem:[#allocation2 + $0x158] sm:$0xff] %v1668_v33  ;;  %v1670_v40 = vadd.f32 %v1376_v38, %v418_v30  ;;  %v1672_v41 = vadd.f32 %v1602_v39, %v420_v31  ;;  %v1761_v30 = vld [vmem:[#allocation2 + $0x20] sm:$0xff] (!%p2176_p5)  ;;  %v1762_v31 = vld [vmem:[#allocation2 + $0x28] sm:$0xff] (!%p2176_p5) }
 0x1e5   : > { %1733 = vst [vmem:[#allocation2 + $0x160] sm:$0xff] %v1669_v36  ;;  %1735 = vst [vmem:[#allocation2 + $0x170] sm:$0xff] %v1671_v37  ;;  %v1763_v32 = vld [vmem:[#allocation2 + $0x30] sm:$0xff] (!%p2176_p5)  ;;  %v1764_v33 = vld [vmem:[#allocation2 + $0x38] sm:$0xff] (!%p2176_p5) }
 0x1e6   : > { %1734 = vst [vmem:[#allocation2 + $0x168] sm:$0xff] %v1670_v40  ;;  %1736 = vst [vmem:[#allocation2 + $0x178] sm:$0xff] %v1672_v41  ;;  %v1765_v34 = vld [vmem:[#allocation2 + $0x40] sm:$0xff] (!%p2176_p5)  ;;  %v1766_v35 = vld [vmem:[#allocation2 + $0x48] sm:$0xff] (!%p2176_p5) }
 0x1e7   : > { %1821 = vst [vmem:[%s2833_s23] sm:$0xff] (!%p2176_p5), %v1757_v26  ;;  %1822 = vst [vmem:[%s2833_s23 + $0x8] sm:$0xff] (!%p2176_p5), %v1758_v27  ;;  %v1767_v36 = vld [vmem:[#allocation2 + $0x50] sm:$0xff] (!%p2176_p5)  ;;  %v1768_v37 = vld [vmem:[#allocation2 + $0x58] sm:$0xff] (!%p2176_p5) }
 0x1e8   : > { %v1380_v46 = vpop.f32.mrb[24].mxu0  ;;  %v1606_v47 = vpop.f32.mrb[24].mxu1  ;;  %1823 = vst [vmem:[%s2833_s23 + $0x10] sm:$0xff] (!%p2176_p5), %v1759_v28  ;;  %1824 = vst [vmem:[%s2833_s23 + $0x18] sm:$0xff] (!%p2176_p5), %v1760_v29  ;;  %v1769_v38 = vld [vmem:[#allocation2 + $0x60] sm:$0xff] (!%p2176_p5)  ;;  %v1770_v39 = vld [vmem:[#allocation2 + $0x68] sm:$0xff] (!%p2176_p5) }
 0x1e9   : > { %v1673_v50 = vadd.f32 %v1380_v46, %v421_v42  ;;  %v1675_v51 = vadd.f32 %v1606_v47, %v423_v43  ;;  %v1382_v52 = vpop.f32.mrb[25].mxu0  ;;  %v1608_v53 = vpop.f32.mrb[25].mxu1  ;;  %1825 = vst [vmem:[%s2833_s23 + $0x20] sm:$0xff] (!%p2176_p5), %v1761_v30  ;;  %1826 = vst [vmem:[%s2833_s23 + $0x28] sm:$0xff] (!%p2176_p5), %v1762_v31  ;;  %v1771_v40 = vld [vmem:[#allocation2 + $0x70] sm:$0xff] (!%p2176_p5)  ;;  %v1772_v41 = vld [vmem:[#allocation2 + $0x78] sm:$0xff] (!%p2176_p5) }
 0x1ea   : > { %v1674_v56 = vadd.f32 %v1382_v52, %v422_v44  ;;  %v1676_v57 = vadd.f32 %v1608_v53, %v424_v45  ;;  %v1384_v58 = vpop.f32.mrb[26].mxu0  ;;  %v1610_v59 = vpop.f32.mrb[26].mxu1  ;;  %1827 = vst [vmem:[%s2833_s23 + $0x30] sm:$0xff] (!%p2176_p5), %v1763_v32  ;;  %1828 = vst [vmem:[%s2833_s23 + $0x38] sm:$0xff] (!%p2176_p5), %v1764_v33  ;;  %v1773_v42 = vld [vmem:[#allocation2 + $0x80] sm:$0xff] (!%p2176_p5)  ;;  %v1774_v43 = vld [vmem:[#allocation2 + $0x88] sm:$0xff] (!%p2176_p5) }
 0x1eb   : > { %1737 = vst [vmem:[#allocation2 + $0x180] sm:$0xff] %v1673_v50  ;;  %1739 = vst [vmem:[#allocation2 + $0x190] sm:$0xff] %v1675_v51  ;;  %v1677_v60 = vadd.f32 %v1384_v58, %v425_v48  ;;  %v1679_v61 = vadd.f32 %v1610_v59, %v427_v49  ;;  %v1386_v62 = vpop.f32.mrb[27].mxu0  ;;  %v1612_v63 = vpop.f32.mrb[27].mxu1  ;;  %v1775_v44 = vld [vmem:[#allocation2 + $0x90] sm:$0xff] (!%p2176_p5)  ;;  %v1776_v45 = vld [vmem:[#allocation2 + $0x98] sm:$0xff] (!%p2176_p5) }
 0x1ec   : > { %1738 = vst [vmem:[#allocation2 + $0x188] sm:$0xff] %v1674_v56  ;;  %1740 = vst [vmem:[#allocation2 + $0x198] sm:$0xff] %v1676_v57  ;;  %v1678_v0 = vadd.f32 %v1386_v62, %v426_v54  ;;  %v1680_v1 = vadd.f32 %v1612_v63, %v428_v55  ;;  %v1777_v46 = vld [vmem:[#allocation2 + $0xa0] sm:$0xff] (!%p2176_p5)  ;;  %v1778_v47 = vld [vmem:[#allocation2 + $0xa8] sm:$0xff] (!%p2176_p5) }
 0x1ed   : > { %1741 = vst [vmem:[#allocation2 + $0x1a0] sm:$0xff] %v1677_v60  ;;  %1743 = vst [vmem:[#allocation2 + $0x1b0] sm:$0xff] %v1679_v61  ;;  %v1779_v48 = vld [vmem:[#allocation2 + $0xb0] sm:$0xff] (!%p2176_p5)  ;;  %v1780_v49 = vld [vmem:[#allocation2 + $0xb8] sm:$0xff] (!%p2176_p5) }
 0x1ee   : > { %1742 = vst [vmem:[#allocation2 + $0x1a8] sm:$0xff] %v1678_v0  ;;  %1744 = vst [vmem:[#allocation2 + $0x1b8] sm:$0xff] %v1680_v1  ;;  %v1781_v50 = vld [vmem:[#allocation2 + $0xc0] sm:$0xff] (!%p2176_p5)  ;;  %v1782_v51 = vld [vmem:[#allocation2 + $0xc8] sm:$0xff] (!%p2176_p5) }
 0x1ef   : > { %1829 = vst [vmem:[%s2833_s23 + $0x40] sm:$0xff] (!%p2176_p5), %v1765_v34  ;;  %1830 = vst [vmem:[%s2833_s23 + $0x48] sm:$0xff] (!%p2176_p5), %v1766_v35  ;;  %v1783_v52 = vld [vmem:[#allocation2 + $0xd0] sm:$0xff] (!%p2176_p5)  ;;  %v1784_v53 = vld [vmem:[#allocation2 + $0xd8] sm:$0xff] (!%p2176_p5) }
 0x1f0   : > { %v1390_v6 = vpop.f32.mrb[28].mxu0  ;;  %v1616_v7 = vpop.f32.mrb[28].mxu1  ;;  %1756 = sbr.rel (%p2176_p5) target bundleno = 527 (0x20f), region = 62  ;;  %1831 = vst [vmem:[%s2833_s23 + $0x50] sm:$0xff] (!%p2176_p5), %v1767_v36  ;;  %1832 = vst [vmem:[%s2833_s23 + $0x58] sm:$0xff] (!%p2176_p5), %v1768_v37  ;;  %v1785_v54 = vld [vmem:[#allocation2 + $0xe0] sm:$0xff] (!%p2176_p5) }
 0x1f1   : > { %v1681_v10 = vadd.f32 %v1390_v6, %v429_v2  ;;  %v1683_v11 = vadd.f32 %v1616_v7, %v431_v3  ;;  %v1392_v12 = vpop.f32.mrb[29].mxu0  ;;  %v1618_v13 = vpop.f32.mrb[29].mxu1  ;;  %1833 = vst [vmem:[%s2833_s23 + $0x60] sm:$0xff] (!%p2176_p5), %v1769_v38  ;;  %1834 = vst [vmem:[%s2833_s23 + $0x68] sm:$0xff] (!%p2176_p5), %v1770_v39  ;;  %v1786_v55 = vld [vmem:[#allocation2 + $0xe8] sm:$0xff] (!%p2176_p5)  ;;  %v1787_v56 = vld [vmem:[#allocation2 + $0xf0] sm:$0xff] (!%p2176_p5) }
 0x1f2   : > { %v1682_v16 = vadd.f32 %v1392_v12, %v430_v4  ;;  %v1684_v17 = vadd.f32 %v1618_v13, %v432_v5  ;;  %v1394_v18 = vpop.f32.mrb[30].mxu0  ;;  %v1620_v19 = vpop.f32.mrb[30].mxu1  ;;  %1835 = vst [vmem:[%s2833_s23 + $0x70] sm:$0xff] (!%p2176_p5), %v1771_v40  ;;  %1836 = vst [vmem:[%s2833_s23 + $0x78] sm:$0xff] (!%p2176_p5), %v1772_v41  ;;  %v1788_v57 = vld [vmem:[#allocation2 + $0xf8] sm:$0xff] (!%p2176_p5)  ;;  %v1789_v58 = vld [vmem:[#allocation2 + $0x100] sm:$0xff] (!%p2176_p5) }
 0x1f3   : > { %1745 = vst [vmem:[#allocation2 + $0x1c0] sm:$0xff] %v1681_v10  ;;  %1747 = vst [vmem:[#allocation2 + $0x1d0] sm:$0xff] %v1683_v11  ;;  %v1685_v20 = vadd.f32 %v1394_v18, %v433_v8  ;;  %v1687_v21 = vadd.f32 %v1620_v19, %v435_v9  ;;  %v1396_v22 = vpop.f32.mrb[31].mxu0  ;;  %v1622_v23 = vpop.f32.mrb[31].mxu1  ;;  %v1790_v59 = vld [vmem:[#allocation2 + $0x108] sm:$0xff] (!%p2176_p5)  ;;  %v1791_v60 = vld [vmem:[#allocation2 + $0x110] sm:$0xff] (!%p2176_p5) }
 0x1f4   : > { %1746 = vst [vmem:[#allocation2 + $0x1c8] sm:$0xff] %v1682_v16  ;;  %1748 = vst [vmem:[#allocation2 + $0x1d8] sm:$0xff] %v1684_v17  ;;  %v1686_v24 = vadd.f32 %v1396_v22, %v434_v14  ;;  %v1688_v25 = vadd.f32 %v1622_v23, %v436_v15  ;;  %v1792_v61 = vld [vmem:[#allocation2 + $0x118] sm:$0xff] (!%p2176_p5)  ;;  %v1793_v62 = vld [vmem:[#allocation2 + $0x120] sm:$0xff] (!%p2176_p5) }
 0x1f5   : > { %1749 = vst [vmem:[#allocation2 + $0x1e0] sm:$0xff] %v1685_v20  ;;  %1751 = vst [vmem:[#allocation2 + $0x1f0] sm:$0xff] %v1687_v21  ;;  %v1794_v63 = vld [vmem:[#allocation2 + $0x128] sm:$0xff] (!%p2176_p5)  ;;  %v1795_v0 = vld [vmem:[#allocation2 + $0x130] sm:$0xff] (!%p2176_p5) }
 0x1f6   : > { %1750 = vst [vmem:[#allocation2 + $0x1e8] sm:$0xff] %v1686_v24  ;;  %1752 = vst [vmem:[#allocation2 + $0x1f8] sm:$0xff] %v1688_v25  ;;  %v1796_v1 = vld [vmem:[#allocation2 + $0x138] sm:$0xff] (!%p2176_p5)  ;;  %v1797_v2 = vld [vmem:[#allocation2 + $0x140] sm:$0xff] (!%p2176_p5) }
 0x1f7   : > { %1837 = vst [vmem:[%s2833_s23 + $0x80] sm:$0xff] %v1773_v42  ;;  %1838 = vst [vmem:[%s2833_s23 + $0x88] sm:$0xff] %v1774_v43  ;;  %v1798_v3 = vld [vmem:[#allocation2 + $0x148] sm:$0xff]  ;;  %v1799_v4 = vld [vmem:[#allocation2 + $0x150] sm:$0xff] }
 0x1f8   : > { %1839 = vst [vmem:[%s2833_s23 + $0x90] sm:$0xff] %v1775_v44  ;;  %1840 = vst [vmem:[%s2833_s23 + $0x98] sm:$0xff] %v1776_v45  ;;  %v1800_v5 = vld [vmem:[#allocation2 + $0x158] sm:$0xff]  ;;  %v1801_v6 = vld [vmem:[#allocation2 + $0x160] sm:$0xff] }
 0x1f9   : > { %1841 = vst [vmem:[%s2833_s23 + $0xa0] sm:$0xff] %v1777_v46  ;;  %1842 = vst [vmem:[%s2833_s23 + $0xa8] sm:$0xff] %v1778_v47  ;;  %v1802_v7 = vld [vmem:[#allocation2 + $0x168] sm:$0xff]  ;;  %v1803_v8 = vld [vmem:[#allocation2 + $0x170] sm:$0xff] }
 0x1fa   : > { %1843 = vst [vmem:[%s2833_s23 + $0xb0] sm:$0xff] %v1779_v48  ;;  %1844 = vst [vmem:[%s2833_s23 + $0xb8] sm:$0xff] %v1780_v49  ;;  %v1804_v9 = vld [vmem:[#allocation2 + $0x178] sm:$0xff]  ;;  %v1805_v10 = vld [vmem:[#allocation2 + $0x180] sm:$0xff] }
 0x1fb   : > { %1845 = vst [vmem:[%s2833_s23 + $0xc0] sm:$0xff] %v1781_v50  ;;  %1846 = vst [vmem:[%s2833_s23 + $0xc8] sm:$0xff] %v1782_v51  ;;  %v1806_v11 = vld [vmem:[#allocation2 + $0x188] sm:$0xff]  ;;  %v1807_v12 = vld [vmem:[#allocation2 + $0x190] sm:$0xff] }
 0x1fc   : > { %1847 = vst [vmem:[%s2833_s23 + $0xd0] sm:$0xff] %v1783_v52  ;;  %1848 = vst [vmem:[%s2833_s23 + $0xd8] sm:$0xff] %v1784_v53  ;;  %v1808_v13 = vld [vmem:[#allocation2 + $0x198] sm:$0xff]  ;;  %v1809_v14 = vld [vmem:[#allocation2 + $0x1a0] sm:$0xff] }
 0x1fd   : > { %1849 = vst [vmem:[%s2833_s23 + $0xe0] sm:$0xff] %v1785_v54  ;;  %1850 = vst [vmem:[%s2833_s23 + $0xe8] sm:$0xff] %v1786_v55  ;;  %v1810_v15 = vld [vmem:[#allocation2 + $0x1a8] sm:$0xff]  ;;  %v1811_v16 = vld [vmem:[#allocation2 + $0x1b0] sm:$0xff] }
 0x1fe   : > { %1851 = vst [vmem:[%s2833_s23 + $0xf0] sm:$0xff] %v1787_v56  ;;  %1852 = vst [vmem:[%s2833_s23 + $0xf8] sm:$0xff] %v1788_v57  ;;  %v1812_v17 = vld [vmem:[#allocation2 + $0x1b8] sm:$0xff]  ;;  %v1813_v18 = vld [vmem:[#allocation2 + $0x1c0] sm:$0xff] }
 0x1ff   : > { %1853 = vst [vmem:[%s2833_s23 + $0x100] sm:$0xff] %v1789_v58  ;;  %1854 = vst [vmem:[%s2833_s23 + $0x108] sm:$0xff] %v1790_v59  ;;  %v1814_v19 = vld [vmem:[#allocation2 + $0x1c8] sm:$0xff]  ;;  %v1815_v20 = vld [vmem:[#allocation2 + $0x1d0] sm:$0xff] }
 0x200   : > { %1855 = vst [vmem:[%s2833_s23 + $0x110] sm:$0xff] %v1791_v60  ;;  %1856 = vst [vmem:[%s2833_s23 + $0x118] sm:$0xff] %v1792_v61  ;;  %v1816_v21 = vld [vmem:[#allocation2 + $0x1d8] sm:$0xff]  ;;  %v1817_v22 = vld [vmem:[#allocation2 + $0x1e0] sm:$0xff] }
 0x201   : > { %1857 = vst [vmem:[%s2833_s23 + $0x120] sm:$0xff] %v1793_v62  ;;  %1858 = vst [vmem:[%s2833_s23 + $0x128] sm:$0xff] %v1794_v63  ;;  %v1818_v23 = vld [vmem:[#allocation2 + $0x1e8] sm:$0xff]  ;;  %v1819_v24 = vld [vmem:[#allocation2 + $0x1f0] sm:$0xff] }
 0x202   : > { %1859 = vst [vmem:[%s2833_s23 + $0x130] sm:$0xff] %v1795_v0  ;;  %1860 = vst [vmem:[%s2833_s23 + $0x138] sm:$0xff] %v1796_v1  ;;  %v1820_v25 = vld [vmem:[#allocation2 + $0x1f8] sm:$0xff] }
 0x203   : > { %1861 = vst [vmem:[%s2833_s23 + $0x140] sm:$0xff] %v1797_v2  ;;  %1862 = vst [vmem:[%s2833_s23 + $0x148] sm:$0xff] %v1798_v3 }
 0x204   : > { %1863 = vst [vmem:[%s2833_s23 + $0x150] sm:$0xff] %v1799_v4  ;;  %1864 = vst [vmem:[%s2833_s23 + $0x158] sm:$0xff] %v1800_v5 }
 0x205   : > { %1865 = vst [vmem:[%s2833_s23 + $0x160] sm:$0xff] %v1801_v6  ;;  %1866 = vst [vmem:[%s2833_s23 + $0x168] sm:$0xff] %v1802_v7 }
 0x206   : > { %1867 = vst [vmem:[%s2833_s23 + $0x170] sm:$0xff] %v1803_v8  ;;  %1868 = vst [vmem:[%s2833_s23 + $0x178] sm:$0xff] %v1804_v9 }
 0x207   : > { %1869 = vst [vmem:[%s2833_s23 + $0x180] sm:$0xff] %v1805_v10  ;;  %1870 = vst [vmem:[%s2833_s23 + $0x188] sm:$0xff] %v1806_v11 }
 0x208   : > { %1871 = vst [vmem:[%s2833_s23 + $0x190] sm:$0xff] %v1807_v12  ;;  %1872 = vst [vmem:[%s2833_s23 + $0x198] sm:$0xff] %v1808_v13 }
 0x209   : > { %1873 = vst [vmem:[%s2833_s23 + $0x1a0] sm:$0xff] %v1809_v14  ;;  %1874 = vst [vmem:[%s2833_s23 + $0x1a8] sm:$0xff] %v1810_v15 }
 0x20a   : > { %1875 = vst [vmem:[%s2833_s23 + $0x1b0] sm:$0xff] %v1811_v16  ;;  %1876 = vst [vmem:[%s2833_s23 + $0x1b8] sm:$0xff] %v1812_v17 }
 0x20b   : > { %1877 = vst [vmem:[%s2833_s23 + $0x1c0] sm:$0xff] %v1813_v18  ;;  %1878 = vst [vmem:[%s2833_s23 + $0x1c8] sm:$0xff] %v1814_v19 }
 0x20c   : > { %1879 = vst [vmem:[%s2833_s23 + $0x1d0] sm:$0xff] %v1815_v20  ;;  %1880 = vst [vmem:[%s2833_s23 + $0x1d8] sm:$0xff] %v1816_v21 }
 0x20d   : > { %1881 = vst [vmem:[%s2833_s23 + $0x1e0] sm:$0xff] %v1817_v22  ;;  %1882 = vst [vmem:[%s2833_s23 + $0x1e8] sm:$0xff] %v1818_v23 }
 0x20e   : > { %1883 = vst [vmem:[%s2833_s23 + $0x1f0] sm:$0xff] %v1819_v24  ;;  %1884 = vst [vmem:[%s2833_s23 + $0x1f8] sm:$0xff] %v1820_v25 }
 0x20f PF: > { %s2185_s12 = sshll.u32 %s2618_s15, 13  ;;  %s1902_s5 = sshll.u32 %s2833_s23, 4  ;;  %s3092_s5 = int_to_ptr.vmem [resolvable:$true] %s1902_s5 }
 0x210   : > { %s3089_s28 = scalar_lea.hbm %s3156_s2, %s2185_s12  ;;  %s3096_s6 = scalar_lea.sflag [#allocation5], %s285_s29 }
 0x211   : > { %s2520_s7 = scalar_lea.vmem %s3092_s5, 8192  ;;  %s2634_s15 = smov [#allocation4]  }
 0x212   : > { %p2521_p6 = scmp.ne.s32.totalorder %s3092_s5, %s2520_s7  ;;  %s2524_s8 = sshll.u32 %s2634_s15, 4  ;;  %s2525_s8 = int_to_ptr.vmem [resolvable:$false] %s2524_s8 }
 0x213   : > { %s2526_s19 = scalar_lea.vmem %s2525_s8, 16384  ;;  %p2527_p10 = scmp.lt.s32.totalorder %s3092_s5, %s2525_s8 }
 0x214   : > { %p2522_p8 = pnand %p2521_p6, %p2724_p7  ;;  %p2528_p11 = scmp.lt.s32.totalorder %s2526_s19, %s2520_s7 }
 0x216   : > { %p2523_p9 = pneg %p2522_p8  ;;  %p2529_p13 = por %p2528_p11, %p2527_p10 }
 0x218   : > { %p2530_p0 = pnand %p2529_p13, %p2523_p9 }
 0x21a   : > { %2533 = shalt.err (!%p2530_p0)
}
 0x21b   : > { %s2534_s29 = scalar_lea.hbm %s3089_s28, 8192  ;;  %s2538_s26 = scalar_lea.hbm %s3156_s2, 16384 }
 0x21c   : > { %p2535_p1 = scmp.ne.s32.totalorder %s3089_s28, %s2534_s29  ;;  %p2539_p4 = scmp.lt.u32.totalorder %s3089_s28, %s3156_s2 }
 0x21d   : > { %p2540_p5 = scmp.lt.u32.totalorder %s2538_s26, %s2534_s29  ;;  %p2542_p8 = scmp.lt.u32.totalorder %s2534_s29, %s3089_s28 }
 0x21e   : > { %p2536_p2 = pnand %p2535_p1, %p2724_p7 }
 0x21f   : > { %p2541_p6 = por %p2540_p5, %p2539_p4 }
 0x220   : > { %p2537_p3 = pneg %p2536_p2 }
 0x221   : > { %p2543_p9 = por %p2542_p8, %p2541_p6 }
 0x223   : > { %p2544_p10 = pnand %p2543_p9, %p2537_p3 }
 0x225   : > { %2547 = shalt.err (!%p2544_p10)
}
 0x226   : > { %s2635_s14 = smov 512   ;;  %s2636_s25 = smov 32  }
 0x227   : > { %2253 = dma.vmem_to_hbm [thread:$0]  (%p2724_p7), %s3092_s5, 8192, %s3089_s28, %s3096_s6, %s2635_s14, %s2635_s14, %s2636_s25  }
 0x228 PF: > { %p2259_p11 = scmp.ge.s32.totalorder %s2630_s18, 2  ;;  %s1917_s7 = sand.u32 1, %s2594_s9  }
 0x229   : > { %s1918_s15 = scalar_lea.sflag [#allocation5], %s1917_s7 }
 0x22a   : > { %p2256_p13 = pnand %p2259_p11, %p2732_p12 }
 0x22c   : > { %2589 = dma.done.wait (!%p2256_p13), %s1918_s15, 8192  }
 0x22d   : > { %2591 = vsyncadd (!%p2256_p13), %s1918_s15, 4294959104  ;;  %s15_s18 = sadd.s32 1, %s2630_s18   ;;  %s3160_s9 = smov %s2598_s10 }
 0x22e   : > { %p12_p0 = scmp.ge.s32.totalorder %s15_s18, 8   ;;  %s3161_s10 = smov %s2602_s11 }
 0x22f   : > { %s3162_s11 = smov %s2737_s3  ;;  %s3163_s12 = smov %s2610_s13 }
 0x230   : > { %s3164_s13 = smov %s2740_s4  ;;  %s3165_s14 = smov %s2622_s16 }
 0x231   : > { %s3166_s15 = smov %s2626_s17  ;;  %s3167_s16 = smov %s3170_s21 }
 0x232   : > { %s3168_s17 = smov %s3174_s22  ;;  %14 = sbr.rel (!%p12_p0) target bundleno = 6 (0x6), region = 111 }
 0x239   :  { %1923 = vsyncpa [#allocation5], 1 }
 0x23a   :  { %1925 = vsyncpa [#allocation5 + $0x1], 1 }

</bundles_post_ra>
